<compile_context>
chip_gen: v7x
topology: tpu7x:2x2x1
jax: 0.10.0
libtpu: 0.0.40
codegen_flags: <defaults>
</compile_context>

<pallas_src>
import functools

import jax
import jax.numpy as jnp
from jax import lax
from jax.experimental import pallas as pl
from jax.experimental.pallas import tpu as pltpu


def _round_up(v, m):
    return ((v + m - 1) // m) * m


# --------------------------------------------------------------------------- #
# Kernel
# --------------------------------------------------------------------------- #
def _gated_attention_kernel(x_ref, wab_ref, bab_ref, wct_ref, bc_ref, out_ref, *, D):
    """One row-tile of x; all (small) parameters stay resident in VMEM.

    x_ref  : (tile_n, L)      f32   (cast to bf16 here -> no extra HBM pass)
    wab_ref: (L, 2*D)         bf16  fused Wa || Wb
    bab_ref: (1, 2*D)         f32   fused ba || bb
    wct_ref: (n_cls, D)       bf16  Wc^T
    bc_ref : (n_cls, 1)       f32
    out_ref: (n_cls, tile_n)  f32   lane-dense, transposed logits
    """
    # One fused MXU matmul covers attention_a AND attention_b (bf16 in, f32 acc).
    x_bf = x_ref[...].astype(jnp.bfloat16)
    h = jnp.dot(x_bf, wab_ref[...], preferred_element_type=jnp.float32)
    h = h + bab_ref[...]                                            # (tile_n, 2D)

    # Fused activation / gating chain (EUP + VPU), kept in f32.
    # TODO(synk): on v7x, if the single EUP slot binds, evaluate bf16 tanh/sigmoid.
    gated = jnp.tanh(h[:, :D]) * jax.nn.sigmoid(h[:, D:])           # (tile_n, D)

    # attention_c in transposed (NT) bf16 form: (n_cls, D) · (tile_n, D)^T over D
    # -> lane-dense (n_cls, tile_n) output block (no (tile_n, 1) masked stores).
    logits_t = lax.dot_general(
        wct_ref[...], gated.astype(jnp.bfloat16),
        dimension_numbers=(((1,), (1,)), ((), ())),
        preferred_element_type=jnp.float32,
    )
    out_ref[...] = (logits_t + bc_ref[...]).astype(out_ref.dtype)


# --------------------------------------------------------------------------- #
# Parameter prep (hoist out of the per-bag hot path: call once per model)
# --------------------------------------------------------------------------- #
def prepare_gated_attention_params(wa, ba, wb, bb, wc, bc):
    """Fuse/pad/lay out the (small) parameters once.

    wa/wb: (L, D); ba/bb: (D,); wc: (D, n_cls); bc: (n_cls,)
    D is zero-padded to a multiple of 128 so in-kernel slices stay lane-aligned.
    Padding is exact: tanh(0)=0 -> gated pad cols are 0, and Wc^T pad cols are 0.
    """
    L, D = wa.shape
    n_cls = wc.shape[1]
    d_pad = _round_up(max(D, 128), 128)

    pw = lambda w: jnp.pad(jnp.asarray(w), ((0, 0), (0, d_pad - D)))
    pb = lambda b: jnp.pad(jnp.asarray(b), (0, d_pad - D))

    w_ab = jnp.concatenate([pw(wa), pw(wb)], axis=1).astype(jnp.bfloat16)   # (L, 2*d_pad)
    b_ab = jnp.concatenate([pb(ba), pb(bb)], axis=0).reshape(1, 2 * d_pad)
    b_ab = b_ab.astype(jnp.float32)
    wc_t = jnp.pad(jnp.asarray(wc).T, ((0, 0), (0, d_pad - D))).astype(jnp.bfloat16)
    bc_c = jnp.asarray(bc).reshape(n_cls, 1).astype(jnp.float32)

    return dict(w_ab=w_ab, b_ab=b_ab, wc_t=wc_t, bc_c=bc_c,
                L=L, D_pad=d_pad, n_cls=n_cls)


# --------------------------------------------------------------------------- #
# Per-chip tiling heuristics
# --------------------------------------------------------------------------- #
def _chip_defaults():
    kind = ""
    try:
        kind = jax.devices()[0].device_kind.lower()
    except Exception:
        pass
    if "v7" in kind:
        # 2 TensorCores/chip, 64 MiB VMEM/TC -> modest tiles, even grid, <=48 MiB scoped.
        return {"n_cores": 2, "max_tile": 4096, "vmem_limit": 48 * 1024 * 1024}
    if "v5" in kind or "v6" in kind:
        # single TensorCore, 128 MiB VMEM -> one big tile when it fits.
        return {"n_cores": 1, "max_tile": 8192, "vmem_limit": 64 * 1024 * 1024}
    # unknown chip / interpret mode: conservative.
    return {"n_cores": 1, "max_tile": 4096, "vmem_limit": 48 * 1024 * 1024}


def _vmem_bounded_tile(L, d_pad, vmem_limit, hard_cap):
    # Rough per-row VMEM footprint: x f32 double-buffered + in-kernel bf16 copy
    # + f32 h + f32 gated (+ slack via the 0.6 budget factor).
    per_row = 2 * L * 4 + L * 2 + 2 * d_pad * 4 + 2 * d_pad * 4
    rows = (int(0.6 * vmem_limit) // per_row) // 128 * 128
    return max(128, min(hard_cap, rows))


def _pick_tile_n(N, max_tile, n_cores, requested):
    if N <= 128:
        return N                                   # single full-extent block
    if requested is not None:
        return min(max(128, _round_up(requested, 128)), _round_up(N, 128))
    if n_cores <= 1:
        # One TensorCore: a single big tile amortizes the ~0.35 us/step overhead.
        return N if N <= max_tile else max_tile
    # Megacore: even number (>=2) of lane-aligned tiles so both TCs stay busy.
    tile = min(max_tile, _round_up(N, 128))
    steps = pl.cdiv(N, tile)
    if steps < 2 or steps % 2:
        steps = max(2, steps + (steps % 2))
        tile = max(128, _round_up(pl.cdiv(N, steps), 128))
    return min(tile, max_tile)


# --------------------------------------------------------------------------- #
# Wrapper
# --------------------------------------------------------------------------- #
def gated_attention(x, params, *, tile_n=None):
    """Pallas GatedAttention forward.

    x: (N, L) float32; params from prepare_gated_attention_params().
    Returns (A, x) with A: (N, n_cls) float32; x is returned unchanged.
    """
    N, L = x.shape
    assert L == params["L"], "feature dim mismatch"
    d_pad, n_cls = params["D_pad"], params["n_cls"]

    cfg = _chip_defaults()
    max_tile = _vmem_bounded_tile(L, d_pad, cfg["vmem_limit"], cfg["max_tile"])
    tile = _pick_tile_n(N, max_tile, cfg["n_cores"], tile_n)
    grid_n = pl.cdiv(N, tile)

    kernel = functools.partial(_gated_attention_kernel, D=d_pad)

    a_t = pl.pallas_call(
        kernel,
        out_shape=jax.ShapeDtypeStruct((n_cls, N), jnp.float32),
        grid=(grid_n,),
        in_specs=[
            pl.BlockSpec((tile, L), lambda i: (i, 0)),         # x row tile (streamed f32)
            pl.BlockSpec((L, 2 * d_pad), lambda i: (0, 0)),    # Wa||Wb   (resident, bf16)
            pl.BlockSpec((1, 2 * d_pad), lambda i: (0, 0)),    # ba||bb   (resident, f32)
            pl.BlockSpec((n_cls, d_pad), lambda i: (0, 0)),    # Wc^T     (resident, bf16)
            pl.BlockSpec((n_cls, 1), lambda i: (0, 0)),        # bc       (resident, f32)
        ],
        out_specs=pl.BlockSpec((n_cls, tile), lambda i: (0, i)),   # lane-dense
        compiler_params=pltpu.CompilerParams(
            dimension_semantics=("parallel",),
            vmem_limit_bytes=cfg["vmem_limit"],
        ),
    )(x, params["w_ab"], params["b_ab"], params["wc_t"], params["bc_c"])

    A = a_t.T                                     # (N, n_cls), tiny wrapper transpose
    return A, x


# --------------------------------------------------------------------------- #
# Test
# --------------------------------------------------------------------------- #
def _init_linear(key, fan_in, fan_out, dtype=jnp.float32):
    """PyTorch nn.Linear default init: U(-1/sqrt(fan_in), 1/sqrt(fan_in))."""
    kw, kb = jax.random.split(key)
    bound = 1.0 / (fan_in ** 0.5)
    w = jax.random.uniform(kw, (fan_in, fan_out), dtype, -bound, bound)
    b = jax.random.uniform(kb, (fan_out,), dtype, -bound, bound)
    return w, b


if __name__ == "__main__":
    # MIL bag: N instances, L input features, D hidden, n_cls attention heads.
    # N / L / D deliberately NOT multiples of 128 to exercise the ragged last
    # block, the full-extent L block and the D->128 padding path.
    N, L, D, n_cls = 777, 200, 96, 3

    key = jax.random.PRNGKey(0)
    kx, ka, kb, kc = jax.random.split(key, 4)

    x = jax.random.normal(kx, (N, L), jnp.float32)
    wa, ba = _init_linear(ka, L, D)        # attention_a Linear(L, D)
    wb, bb = _init_linear(kb, L, D)        # attention_b Linear(L, D)
    wc, bc = _init_linear(kc, D, n_cls)    # attention_c Linear(D, n_cls)

    params = prepare_gated_attention_params(wa, ba, wb, bb, wc, bc)

    # Pure-JAX f32 reference (kernel uses bf16 MXU inputs -> loose tolerance).
    a_ref = jnp.tanh(x @ wa + ba)
    b_ref = jax.nn.sigmoid(x @ wb + bb)
    A_ref = (a_ref * b_ref) @ wc + bc

    # 1) default per-chip tiling (single big tile on 1-TC chips)
    A, x_out = gated_attention(x, params)
    A = jax.block_until_ready(A)
    x_out = jax.block_until_ready(x_out)
    assert A.shape == (N, n_cls) and x_out.shape == (N, L)
    assert jnp.allclose(A, A_ref, atol=2e-2, rtol=2e-2), \
        float(jnp.max(jnp.abs(A - A_ref)))
    assert jnp.array_equal(x_out, x)

    # 2) forced small tile -> multi-step grid with a ragged last block
    A2, _ = gated_attention(x, params, tile_n=256)
    A2 = jax.block_until_ready(A2)
    assert jnp.allclose(A2, A_ref, atol=2e-2, rtol=2e-2), \
        float(jnp.max(jnp.abs(A2 - A_ref)))

    print("KERNEL_OK")
</pallas_src>

<mosaic_0001>
module attributes {stable_mosaic.version = 11 : i64} {
  func.func @_gated_attention_kernel(%arg0: i32, %arg1: memref<777x200xf32, #tpu.memory_space<vmem>>, %arg2: memref<200x256xbf16, #tpu.memory_space<vmem>>, %arg3: memref<1x256xf32, #tpu.memory_space<vmem>>, %arg4: memref<3x128xbf16, #tpu.memory_space<vmem>>, %arg5: memref<3x1xf32, #tpu.memory_space<vmem>>, %arg6: memref<3x777xf32, #tpu.memory_space<vmem>>) attributes {dimension_semantics = [#tpu.dimension_semantics<parallel>], iteration_bounds = array<i64: 1>, scalar_prefetch = 0 : i64, scratch_operands = 0 : i64, tpu.core_type = #tpu.core_type<tc>, window_params = [{transform_indices = @transform_0, window_bounds = array<i64: 777, 200>}, {pipeline_mode = #tpu.pipeline_mode<synchronous>, transform_indices = @transform_1, window_bounds = array<i64: 200, 256>}, {pipeline_mode = #tpu.pipeline_mode<synchronous>, transform_indices = @transform_2, window_bounds = array<i64: 1, 256>}, {pipeline_mode = #tpu.pipeline_mode<synchronous>, transform_indices = @transform_3, window_bounds = array<i64: 3, 128>}, {pipeline_mode = #tpu.pipeline_mode<synchronous>, transform_indices = @transform_4, window_bounds = array<i64: 3, 1>}, {transform_indices = @transform_5, window_bounds = array<i64: 3, 777>}]} {
    %c0 = arith.constant 0 : index
    %c0_0 = arith.constant 0 : index
    %0 = vector.load %arg1[%c0, %c0_0] : memref<777x200xf32, #tpu.memory_space<vmem>>, vector<777x200xf32>
    %1 = arith.truncf %0 : vector<777x200xf32> to vector<777x200xbf16>
    %c0_1 = arith.constant 0 : index
    %c0_2 = arith.constant 0 : index
    %2 = vector.load %arg2[%c0_1, %c0_2] : memref<200x256xbf16, #tpu.memory_space<vmem>>, vector<200x256xbf16>
    %cst = arith.constant dense<0.000000e+00> : vector<777x256xf32>
    %3 = tpu.matmul %1, %2, %cst {dimension_numbers = #tpu.dot_dimension_numbers<[1], [0], [0], [1], [0, 0, 1, 1], [], []>} : vector<777x200xbf16>, vector<200x256xbf16>, vector<777x256xf32> -> vector<777x256xf32>
    %c0_3 = arith.constant 0 : index
    %c0_4 = arith.constant 0 : index
    %4 = vector.load %arg3[%c0_3, %c0_4] : memref<1x256xf32, #tpu.memory_space<vmem>>, vector<1x256xf32>
    %5 = vector.broadcast %4 : vector<1x256xf32> to vector<777x256xf32>
    %6 = arith.addf %3, %5 : vector<777x256xf32>
    %7 = vector.extract_strided_slice %6 {offsets = [0, 0], sizes = [777, 128], strides = [1, 1]} : vector<777x256xf32> to vector<777x128xf32>
    %8 = math.tanh %7 : vector<777x128xf32>
    %9 = vector.extract_strided_slice %6 {offsets = [0, 128], sizes = [777, 128], strides = [1, 1]} : vector<777x256xf32> to vector<777x128xf32>
    %10 = arith.negf %9 : vector<777x128xf32>
    %11 = math.exp %10 : vector<777x128xf32>
    %cst_5 = arith.constant 1.000000e+00 : f32
    %12 = vector.broadcast %cst_5 : f32 to vector<777x128xf32>
    %13 = arith.addf %12, %11 : vector<777x128xf32>
    %14 = arith.divf %12, %13 : vector<777x128xf32>
    %15 = arith.mulf %8, %14 : vector<777x128xf32>
    %c0_6 = arith.constant 0 : index
    %c0_7 = arith.constant 0 : index
    %16 = vector.load %arg4[%c0_6, %c0_7] : memref<3x128xbf16, #tpu.memory_space<vmem>>, vector<3x128xbf16>
    %17 = arith.truncf %15 : vector<777x128xf32> to vector<777x128xbf16>
    %cst_8 = arith.constant dense<0.000000e+00> : vector<3x777xf32>
    %18 = tpu.matmul %16, %17, %cst_8 {dimension_numbers = #tpu.dot_dimension_numbers<[1], [1], [0], [0], [0, 0, 1, 0], [], []>} : vector<3x128xbf16>, vector<777x128xbf16>, vector<3x777xf32> -> vector<3x777xf32>
    %c0_9 = arith.constant 0 : index
    %c0_10 = arith.constant 0 : index
    %19 = vector.load %arg5[%c0_9, %c0_10] : memref<3x1xf32, #tpu.memory_space<vmem>>, vector<3x1xf32>
    %20 = vector.broadcast %19 : vector<3x1xf32> to vector<3x777xf32>
    %21 = arith.addf %18, %20 : vector<3x777xf32>
    %c0_11 = arith.constant 0 : index
    %c0_12 = arith.constant 0 : index
    %22 = vector.load %arg6[%c0_11, %c0_12] : memref<3x777xf32, #tpu.memory_space<vmem>>, vector<3x777xf32>
    tpu.vector_store %arg6[%c0_11, %c0_12], %21 {strides = array<i32>} : memref<3x777xf32, #tpu.memory_space<vmem>>, vector<3x777xf32>,
    return
  }
  func.func @transform_0(%arg0: i32) -> (i32, i32) {
    %c0_i32 = arith.constant 0 : i32
    %c0_i32_0 = arith.constant 0 : i32
    return %arg0, %c0_i32 : i32, i32
  }
  func.func @transform_1(%arg0: i32) -> (i32, i32) {
    %c0_i32 = arith.constant 0 : i32
    %c0_i32_0 = arith.constant 0 : i32
    %c0_i32_1 = arith.constant 0 : i32
    return %c0_i32, %c0_i32_0 : i32, i32
  }
  func.func @transform_2(%arg0: i32) -> (i32, i32) {
    %c0_i32 = arith.constant 0 : i32
    %c0_i32_0 = arith.constant 0 : i32
    %c0_i32_1 = arith.constant 0 : i32
    return %c0_i32, %c0_i32_0 : i32, i32
  }
  func.func @transform_3(%arg0: i32) -> (i32, i32) {
    %c0_i32 = arith.constant 0 : i32
    %c0_i32_0 = arith.constant 0 : i32
    %c0_i32_1 = arith.constant 0 : i32
    return %c0_i32, %c0_i32_0 : i32, i32
  }
  func.func @transform_4(%arg0: i32) -> (i32, i32) {
    %c0_i32 = arith.constant 0 : i32
    %c0_i32_0 = arith.constant 0 : i32
    %c0_i32_1 = arith.constant 0 : i32
    return %c0_i32, %c0_i32_0 : i32, i32
  }
  func.func @transform_5(%arg0: i32) -> (i32, i32) {
    %c0_i32 = arith.constant 0 : i32
    %c0_i32_0 = arith.constant 0 : i32
    return %c0_i32, %arg0 : i32, i32
  }
}

</mosaic_0001>

<bundles_post_ra>
// kernel: tpu_custom_call.1
= control target key start
LH: loop header
LB: loop body
LE: loop exit
PB: predicated region body
PF: predicated region fallthrough
CT: control target
= control target key end

     0   :  { %vm478_vm0 = vcmask 588800   ;;  %s4518_s0 = inlined_call_operand.vmem [shape: f32[777,200], index: 0, kind: input, shape index: {}]   ;;  %s4519_s1 = inlined_call_operand.vmem [shape: bf16[200,256], index: 1, kind: input, shape index: {}]   ;;  %s4520_s2 = inlined_call_operand.vmem [shape: f32[1,256], index: 2, kind: input, shape index: {}]   ;;  %s4521_s3 = inlined_call_operand.vmem [shape: bf16[3,128], index: 3, kind: input, shape index: {}]   ;;  %s4522_s4 = inlined_call_operand.vmem [shape: f32[3,1], index: 4, kind: input, shape index: {}]   ;;  %s4523_s5 = inlined_call_operand.hbm [shape: f32[3,777], index: 5, kind: output, shape index: {}]  }
   0x1   :  { %v2457_v0 = vld [vmem:[%s4519_s1 + $0x4] ss:$8 sps:$4 sm:$0xff]   ;;  %v2459_v1 = vld [vmem:[%s4519_s1] ss:$8 sps:$4 sm:$0xff]   ;;  %v2460_v2 = vld [vmem:[%s4519_s1 + $0x14] ss:$8 sps:$4 sm:$0xff]  }
   0x2   :  { %633 = vmatprep.subr.bf16.mxu0 %v2457_v0  ;;  %2426 = vmatprep.subr.bf16.mxu1 %v2457_v0  ;;  %v2462_v3 = vld [vmem:[%s4519_s1 + $0x10] ss:$8 sps:$4 sm:$0xff]   ;;  %v2463_v4 = vld [vmem:[%s4519_s1 + $0x24] ss:$8 sps:$4 sm:$0xff]   ;;  %v2465_v5 = vld [vmem:[%s4519_s1 + $0x20] ss:$8 sps:$4 sm:$0xff]  }
   0x3   :  { %634 = vmatpush1.bf16.msra.mxu0 %v2459_v1  ;;  %2439 = vmatpush1.bf16.msra.mxu1 %v2459_v1  ;;  %v2466_v6 = vld [vmem:[%s4519_s1 + $0x34] ss:$8 sps:$4 sm:$0xff]   ;;  %v2468_v7 = vld [vmem:[%s4519_s1 + $0x30] ss:$8 sps:$4 sm:$0xff]   ;;  %v2469_v8 = vld [vmem:[%s4519_s1 + $0x44] ss:$8 sps:$4 sm:$0xff]  }
   0x4   :  { %635 = vmatprep.subr.bf16.mxu0 %v2460_v2  ;;  %2427 = vmatprep.subr.bf16.mxu1 %v2460_v2  ;;  %v2471_v9 = vld [vmem:[%s4519_s1 + $0x40] ss:$8 sps:$4 sm:$0xff]   ;;  %v2472_v10 = vld [vmem:[%s4519_s1 + $0x54] ss:$8 sps:$4 sm:$0xff]   ;;  %v2474_v14 = vld [vmem:[%s4519_s1 + $0x50] ss:$8 sps:$4 sm:$0xff]  }
   0x5   :  { %v23_v11 = vld [vmem:[%s4518_s0 + $0x8] sm:$0xff]  ;;  %v25_v12 = vld [vmem:[%s4518_s0 + $0x18] sm:$0xff] }
   0x6   :  { %v219_v13 = vpack.c.bf16 %v25_v12, %v23_v11  ;;  %v2475_v15 = vld [vmem:[%s4519_s1 + $0x64] ss:$8 sps:$4 sm:$0xff]   ;;  %v2477_v16 = vld [vmem:[%s4519_s1 + $0x60] ss:$8 sps:$4 sm:$0xff]   ;;  %v2478_v17 = vld [vmem:[%s4519_s1 + $0x74] ss:$8 sps:$4 sm:$0xff]  }
   0x7   :  { %636 = vmatpush1.bf16.msra.mxu0 %v2462_v3  ;;  %2440 = vmatpush1.bf16.msra.mxu1 %v2462_v3  ;;  %v2480_v18 = vld [vmem:[%s4519_s1 + $0x70] ss:$8 sps:$4 sm:$0xff]   ;;  %v2481_v19 = vld [vmem:[%s4519_s1 + $0x84] ss:$8 sps:$4 sm:$0xff]   ;;  %v2483_v20 = vld [vmem:[%s4519_s1 + $0x80] ss:$8 sps:$4 sm:$0xff]  }
   0x8   :  { %637 = vmatprep.subr.bf16.mxu0 %v2463_v4  ;;  %2428 = vmatprep.subr.bf16.mxu1 %v2463_v4  ;;  %v2484_v21 = vld [vmem:[%s4519_s1 + $0x94] ss:$8 sps:$4 sm:$0xff]   ;;  %v2486_v22 = vld [vmem:[%s4519_s1 + $0x90] ss:$8 sps:$4 sm:$0xff]   ;;  %v2487_v23 = vld [vmem:[%s4519_s1 + $0xa4] ss:$8 sps:$4 sm:$0xff]  }
   0x9   :  { %2217 = vmatprep.mubr.msk.bf16.mxu0 %vm478_vm0, %v219_v13 }
   0xb   :  { %638 = vmatpush1.bf16.msra.mxu0 %v2465_v5  ;;  %2441 = vmatpush1.bf16.msra.mxu1 %v2465_v5 }
   0xc   :  { %639 = vmatprep.subr.bf16.mxu0 %v2466_v6  ;;  %2429 = vmatprep.subr.bf16.mxu1 %v2466_v6 }
   0xf   :  { %640 = vmatpush1.bf16.msra.mxu0 %v2468_v7  ;;  %2442 = vmatpush1.bf16.msra.mxu1 %v2468_v7 }
  0x10   :  { %641 = vmatprep.subr.bf16.mxu0 %v2469_v8  ;;  %2430 = vmatprep.subr.bf16.mxu1 %v2469_v8 }
  0x13   :  { %642 = vmatpush1.bf16.msra.mxu0 %v2471_v9  ;;  %2443 = vmatpush1.bf16.msra.mxu1 %v2471_v9 }
  0x14   :  { %643 = vmatprep.subr.bf16.mxu0 %v2472_v10  ;;  %2431 = vmatprep.subr.bf16.mxu1 %v2472_v10 }
  0x17   :  { %644 = vmatpush1.bf16.msra.mxu0 %v2474_v14  ;;  %2444 = vmatpush1.bf16.msra.mxu1 %v2474_v14 }
  0x18   :  { %645 = vmatprep.subr.bf16.mxu0 %v2475_v15  ;;  %2432 = vmatprep.subr.bf16.mxu1 %v2475_v15 }
  0x1b   :  { %646 = vmatpush1.bf16.msra.mxu0 %v2477_v16  ;;  %2445 = vmatpush1.bf16.msra.mxu1 %v2477_v16 }
  0x1c   :  { %647 = vmatprep.subr.bf16.mxu0 %v2478_v17  ;;  %2433 = vmatprep.subr.bf16.mxu1 %v2478_v17 }
  0x1f   :  { %648 = vmatpush1.bf16.msra.mxu0 %v2480_v18  ;;  %2446 = vmatpush1.bf16.msra.mxu1 %v2480_v18 }
  0x20   :  { %649 = vmatprep.subr.bf16.mxu0 %v2481_v19  ;;  %2434 = vmatprep.subr.bf16.mxu1 %v2481_v19 }
  0x23   :  { %650 = vmatpush1.bf16.msra.mxu0 %v2483_v20  ;;  %2447 = vmatpush1.bf16.msra.mxu1 %v2483_v20 }
  0x24   :  { %651 = vmatprep.subr.bf16.mxu0 %v2484_v21 }
  0x25   :  { %10 = vsyncpa [#allocation3], 0  ;;  %2435 = vmatprep.subr.bf16.mxu1 %v2484_v21  ;;  %v2489_v24 = vld [vmem:[%s4519_s1 + $0xa0] ss:$8 sps:$4 sm:$0xff]   ;;  %v2490_v25 = vld [vmem:[%s4519_s1 + $0xb4] ss:$8 sps:$4 sm:$0xff]  }
  0x26   :  { %v340_v26 = vld [vmem:[%s4519_s1 + $0xc0] sm:$0xff]  ;;  %v2492_v27 = vld [vmem:[%s4519_s1 + $0xb0] ss:$8 sps:$4 sm:$0xff]   ;;  %vm626_vm1 = vcmask 1043456   ;;  %v27_v33 = vld [vmem:[%s4518_s0 + $0x28] sm:$0xff]  ;;  %vm3110_vm2 = vmmov 0  }
  0x27   :  { %652 = vmatpush1.bf16.msra.mxu0 %v2486_v22  ;;  %2448 = vmatpush1.bf16.msra.mxu1 %v2486_v22  ;;  %v2215_v28 = vcombine.high %v340_v26, %v340_v26  ;;  %v2214_v29 = vcombine.low %v340_v26, %v340_v26  ;;  %v22_v30 = vld [vmem:[%s4518_s0] sm:$0xff]  ;;  %v24_v31 = vld [vmem:[%s4518_s0 + $0x10] sm:$0xff]  ;;  %v29_v34 = vld [vmem:[%s4518_s0 + $0x38] sm:$0xff]  ;;  %vm2174_vm3 = vcmask 67584  }
  0x28   :  { %653 = vmatprep.subr.bf16.mxu0 %v2487_v23  ;;  %2436 = vmatprep.subr.bf16.mxu1 %v2487_v23  ;;  %v218_v35 = vpack.c.bf16 %v24_v31, %v22_v30  ;;  %v221_v36 = vpack.c.bf16 %v29_v34, %v27_v33  ;;  %v26_v37 = vld [vmem:[%s4518_s0 + $0x20] sm:$0xff]  ;;  %v28_v38 = vld [vmem:[%s4518_s0 + $0x30] sm:$0xff]  ;;  %v31_v39 = vld [vmem:[%s4518_s0 + $0x48] sm:$0xff] }
  0x29   :  { %v628_v32 = vsel %vm626_vm1, %v2214_v29, 0  ;;  %v33_v40 = vld [vmem:[%s4518_s0 + $0x58] sm:$0xff]  ;;  %v220_v41 = vpack.c.bf16 %v28_v38, %v26_v37  ;;  %v30_v43 = vld [vmem:[%s4518_s0 + $0x40] sm:$0xff]  ;;  %v32_v44 = vld [vmem:[%s4518_s0 + $0x50] sm:$0xff] }
  0x2a   :  { %v223_v42 = vpack.c.bf16 %v33_v40, %v31_v39  ;;  %v35_v45 = vld [vmem:[%s4518_s0 + $0x68] sm:$0xff]  ;;  %v37_v46 = vld [vmem:[%s4518_s0 + $0x78] sm:$0xff]  ;;  %v222_v47 = vpack.c.bf16 %v32_v44, %v30_v43  ;;  %v34_v49 = vld [vmem:[%s4518_s0 + $0x60] sm:$0xff] }
  0x2b   :  { %654 = vmatpush1.bf16.msra.mxu0 %v2489_v24  ;;  %2449 = vmatpush1.bf16.msra.mxu1 %v2489_v24  ;;  %v225_v48 = vpack.c.bf16 %v37_v46, %v35_v45  ;;  %v36_v50 = vld [vmem:[%s4518_s0 + $0x70] sm:$0xff]  ;;  %v39_v51 = vld [vmem:[%s4518_s0 + $0x88] sm:$0xff]  ;;  %v41_v52 = vld [vmem:[%s4518_s0 + $0x98] sm:$0xff] }
  0x2c   :  { %655 = vmatprep.subr.bf16.mxu0 %v2490_v25  ;;  %2437 = vmatprep.subr.bf16.mxu1 %v2490_v25  ;;  %v224_v53 = vpack.c.bf16 %v36_v50, %v34_v49  ;;  %v227_v54 = vpack.c.bf16 %v41_v52, %v39_v51  ;;  %v38_v55 = vld [vmem:[%s4518_s0 + $0x80] sm:$0xff]  ;;  %v40_v56 = vld [vmem:[%s4518_s0 + $0x90] sm:$0xff]  ;;  %v43_v57 = vld [vmem:[%s4518_s0 + $0xa8] sm:$0xff] }
  0x2d   :  { %v45_v58 = vld [vmem:[%s4518_s0 + $0xb8] sm:$0xff]  ;;  %v226_v59 = vpack.c.bf16 %v40_v56, %v38_v55  ;;  %v42_v61 = vld [vmem:[%s4518_s0 + $0xa0] sm:$0xff]  ;;  %v44_v62 = vld [vmem:[%s4518_s0 + $0xb0] sm:$0xff] }
  0x2e   :  { %v229_v60 = vpack.c.bf16 %v45_v58, %v43_v57  ;;  %v47_v63 = vld [vmem:[%s4518_s0 + $0xc8] sm:$0xff]  ;;  %v49_v0 = vld [vmem:[%s4518_s0 + $0xd8] sm:$0xff]  ;;  %v228_v1 = vpack.c.bf16 %v44_v62, %v42_v61  ;;  %v46_v3 = vld [vmem:[%s4518_s0 + $0xc0] sm:$0xff] }
  0x2f   :  { %656 = vmatpush1.bf16.msra.mxu0 %v2492_v27  ;;  %2450 = vmatpush1.bf16.msra.mxu1 %v2492_v27  ;;  %v231_v2 = vpack.c.bf16 %v49_v0, %v47_v63  ;;  %v48_v4 = vld [vmem:[%s4518_s0 + $0xd0] sm:$0xff]  ;;  %v51_v5 = vld [vmem:[%s4518_s0 + $0xe8] sm:$0xff]  ;;  %v53_v6 = vld [vmem:[%s4518_s0 + $0xf8] sm:$0xff] }
  0x30   :  { %2216 = vmatprep.subr.msk.bf16.mxu0 %vm626_vm1, %v2215_v28  ;;  %2438 = vmatprep.subr.msk.bf16.mxu1 %vm626_vm1, %v2215_v28  ;;  %v230_v7 = vpack.c.bf16 %v48_v4, %v46_v3  ;;  %v233_v8 = vpack.c.bf16 %v53_v6, %v51_v5  ;;  %v50_v9 = vld [vmem:[%s4518_s0 + $0xe0] sm:$0xff]  ;;  %v52_v10 = vld [vmem:[%s4518_s0 + $0xf0] sm:$0xff]  ;;  %v55_v11 = vld [vmem:[%s4518_s0 + $0x108] sm:$0xff] }
  0x31   :  { %v57_v12 = vld [vmem:[%s4518_s0 + $0x118] sm:$0xff]  ;;  %v232_v13 = vpack.c.bf16 %v52_v10, %v50_v9  ;;  %v159_v15 = vld [vmem:[%s4518_s0 + $0x448] sm:$0xff]  ;;  %v158_v17 = vld [vmem:[%s4518_s0 + $0x440] sm:$0xff] }
  0x32   :  { %v235_v14 = vpack.c.bf16 %v57_v12, %v55_v11  ;;  %v161_v16 = vld [vmem:[%s4518_s0 + $0x458] sm:$0xff]  ;;  %v54_v18 = vld [vmem:[%s4518_s0 + $0x100] sm:$0xff]  ;;  %v56_v19 = vld [vmem:[%s4518_s0 + $0x110] sm:$0xff] }
  0x33   :  { %658 = vmatpush1.bf16.msra.mxu0 %v628_v32  ;;  %2451 = vmatpush1.bf16.msra.mxu1 %v628_v32  ;;  %v287_v20 = vpack.c.bf16 %v161_v16, %v159_v15  ;;  %v160_v21 = vld [vmem:[%s4518_s0 + $0x450] sm:$0xff]  ;;  %v59_v22 = vld [vmem:[%s4518_s0 + $0x128] sm:$0xff]  ;;  %v61_v23 = vld [vmem:[%s4518_s0 + $0x138] sm:$0xff]  ;;  %v234_v25 = vpack.c.bf16 %v56_v19, %v54_v18 }
  0x34   :  { %v286_v24 = vpack.c.bf16 %v160_v21, %v158_v17  ;;  %v237_v26 = vpack.c.bf16 %v61_v23, %v59_v22  ;;  %v163_v27 = vld [vmem:[%s4518_s0 + $0x468] sm:$0xff]  ;;  %v165_v28 = vld [vmem:[%s4518_s0 + $0x478] sm:$0xff]  ;;  %v162_v29 = vld [vmem:[%s4518_s0 + $0x460] sm:$0xff] }
  0x35   :  { %2251 = vmatprep.mubr.msk.bf16.mxu1 %vm478_vm0, %v287_v20  ;;  %v58_v30 = vld [vmem:[%s4518_s0 + $0x120] sm:$0xff]  ;;  %v60_v31 = vld [vmem:[%s4518_s0 + $0x130] sm:$0xff]  ;;  %v289_v32 = vpack.c.bf16 %v165_v28, %v163_v27  ;;  %v63_v34 = vld [vmem:[%s4518_s0 + $0x148] sm:$0xff] }
  0x36   :  { %666 = vmatmul.mubr.bf16.vlgmr.msra.gmra.mrb[0].mxu0 %v218_v35  ;;  %1006 = vmatmul.mubr.bf16.vlgmr.msra.gmra.mrb[0].mxu1 %v286_v24  ;;  %v164_v33 = vld [vmem:[%s4518_s0 + $0x470] sm:$0xff]  ;;  %v65_v35 = vld [vmem:[%s4518_s0 + $0x158] sm:$0xff]  ;;  %v236_v37 = vpack.c.bf16 %v60_v31, %v58_v30  ;;  %v167_v39 = vld [vmem:[%s4518_s0 + $0x488] sm:$0xff] }
  0x37   :  { %2218 = vmatprep.mubr.msk.bf16.mxu0 %vm478_vm0, %v221_v36  ;;  %v288_v36 = vpack.c.bf16 %v164_v33, %v162_v29  ;;  %2252 = vmatprep.mubr.msk.bf16.mxu1 %vm478_vm0, %v289_v32  ;;  %v239_v38 = vpack.c.bf16 %v65_v35, %v63_v34  ;;  %v169_v40 = vld [vmem:[%s4518_s0 + $0x498] sm:$0xff]  ;;  %v64_v43 = vld [vmem:[%s4518_s0 + $0x150] sm:$0xff]  ;;  %v67_v46 = vld [vmem:[%s4518_s0 + $0x168] sm:$0xff] }
  0x38   :  { %v291_v44 = vpack.c.bf16 %v169_v40, %v167_v39  ;;  %v168_v45 = vld [vmem:[%s4518_s0 + $0x490] sm:$0xff]  ;;  %v66_v51 = vld [vmem:[%s4518_s0 + $0x160] sm:$0xff]  ;;  %v171_v55 = vld [vmem:[%s4518_s0 + $0x4a8] sm:$0xff] }
  0x39   :  { %v68_v52 = vld [vmem:[%s4518_s0 + $0x170] sm:$0xff]  ;;  %v173_v56 = vld [vmem:[%s4518_s0 + $0x4b8] sm:$0xff]  ;;  %v170_v58 = vld [vmem:[%s4518_s0 + $0x4a0] sm:$0xff] }
  0x3a   :  { %v293_v57 = vpack.c.bf16 %v173_v56, %v171_v55  ;;  %v70_v63 = vld [vmem:[%s4518_s0 + $0x180] sm:$0xff]  ;;  %v72_v0 = vld [vmem:[%s4518_s0 + $0x190] sm:$0xff]  ;;  %v175_v3 = vld [vmem:[%s4518_s0 + $0x4c8] sm:$0xff] }
  0x3b   :  { %v177_v4 = vld [vmem:[%s4518_s0 + $0x4d8] sm:$0xff]  ;;  %v174_v6 = vld [vmem:[%s4518_s0 + $0x4c0] sm:$0xff]  ;;  %v76_v12 = vld [vmem:[%s4518_s0 + $0x1b0] sm:$0xff] }
  0x3c   :  { %v295_v5 = vpack.c.bf16 %v177_v4, %v175_v3  ;;  %v74_v11 = vld [vmem:[%s4518_s0 + $0x1a0] sm:$0xff]  ;;  %v179_v16 = vld [vmem:[%s4518_s0 + $0x4e8] sm:$0xff]  ;;  %v181_v17 = vld [vmem:[%s4518_s0 + $0x4f8] sm:$0xff] }
  0x3d   :  { %v244_v15 = vpack.c.bf16 %v76_v12, %v74_v11  ;;  %v297_v19 = vpack.c.bf16 %v181_v17, %v179_v16  ;;  %v178_v20 = vld [vmem:[%s4518_s0 + $0x4e0] sm:$0xff]  ;;  %v180_v21 = vld [vmem:[%s4518_s0 + $0x4f0] sm:$0xff]  ;;  %v183_v28 = vld [vmem:[%s4518_s0 + $0x508] sm:$0xff] }
  0x3e   :  { %676 = vmatmul.mubr.bf16.gmra.mrb[4].mxu0 %v220_v41  ;;  %1016 = vmatmul.mubr.bf16.gmra.mrb[4].mxu1 %v288_v36  ;;  %v166_v41 = vld [vmem:[%s4518_s0 + $0x480] sm:$0xff]  ;;  %v296_v22 = vpack.c.bf16 %v180_v21, %v178_v20  ;;  %v80_v24 = vld [vmem:[%s4518_s0 + $0x1d0] sm:$0xff]  ;;  %v185_v29 = vld [vmem:[%s4518_s0 + $0x518] sm:$0xff] }
  0x3f   :  { %2219 = vmatprep.mubr.msk.bf16.mxu0 %vm478_vm0, %v223_v42  ;;  %v62_v42 = vld [vmem:[%s4518_s0 + $0x140] sm:$0xff]  ;;  %2253 = vmatprep.mubr.msk.bf16.mxu1 %vm478_vm0, %v291_v44  ;;  %v299_v31 = vpack.c.bf16 %v185_v29, %v183_v28  ;;  %v184_v33 = vld [vmem:[%s4518_s0 + $0x510] sm:$0xff]  ;;  %v187_v40 = vld [vmem:[%s4518_s0 + $0x528] sm:$0xff] }
  0x40   :  { %v238_v49 = vpack.c.bf16 %v64_v43, %v62_v42  ;;  %v78_v23 = vld [vmem:[%s4518_s0 + $0x1c0] sm:$0xff]  ;;  %v84_v36 = vld [vmem:[%s4518_s0 + $0x1f0] sm:$0xff]  ;;  %v199_v12 = vld [vmem:[%s4518_s0 + $0x588] sm:$0xff] }
  0x41   :  { %v246_v27 = vpack.c.bf16 %v80_v24, %v78_v23  ;;  %v182_v32 = vld [vmem:[%s4518_s0 + $0x500] sm:$0xff]  ;;  %v200_v17 = vld [vmem:[%s4518_s0 + $0x590] sm:$0xff]  ;;  %v103_v21 = vld [vmem:[%s4518_s0 + $0x288] sm:$0xff] }
  0x42   :  { %v298_v34 = vpack.c.bf16 %v184_v33, %v182_v32  ;;  %v82_v35 = vld [vmem:[%s4518_s0 + $0x1e0] sm:$0xff]  ;;  %v100_v20 = vld [vmem:[%s4518_s0 + $0x270] sm:$0xff]  ;;  %v203_v24 = vld [vmem:[%s4518_s0 + $0x5a8] sm:$0xff] }
  0x43   :  { %v248_v39 = vpack.c.bf16 %v84_v36, %v82_v35  ;;  %v186_v44 = vld [vmem:[%s4518_s0 + $0x520] sm:$0xff]  ;;  %v204_v29 = vld [vmem:[%s4518_s0 + $0x5b0] sm:$0xff]  ;;  %v107_v33 = vld [vmem:[%s4518_s0 + $0x2a8] sm:$0xff] }
  0x44   :  { %v190_v56 = vld [vmem:[%s4518_s0 + $0x540] sm:$0xff]  ;;  %v104_v32 = vld [vmem:[%s4518_s0 + $0x290] sm:$0xff]  ;;  %v207_v36 = vld [vmem:[%s4518_s0 + $0x5c8] sm:$0xff] }
  0x45   :  { %v194_v4 = vld [vmem:[%s4518_s0 + $0x560] sm:$0xff] }
  0x46   :  { %686 = vmatmul.mubr.bf16.gmra.mrb[8].mxu0 %v222_v47  ;;  %v69_v47 = vld [vmem:[%s4518_s0 + $0x178] sm:$0xff]  ;;  %v198_v16 = vld [vmem:[%s4518_s0 + $0x580] sm:$0xff] }
  0x47   :  { %2220 = vmatprep.mubr.msk.bf16.mxu0 %vm478_vm0, %v225_v48  ;;  %v290_v48 = vpack.c.bf16 %v168_v45, %v166_v41  ;;  %v241_v50 = vpack.c.bf16 %v69_v47, %v67_v46  ;;  %v189_v41 = vld [vmem:[%s4518_s0 + $0x538] sm:$0xff]  ;;  %v188_v45 = vld [vmem:[%s4518_s0 + $0x530] sm:$0xff]  ;;  %v86_v47 = vld [vmem:[%s4518_s0 + $0x200] sm:$0xff] }
  0x48   :  { %v301_v43 = vpack.c.bf16 %v189_v41, %v187_v40  ;;  %v300_v46 = vpack.c.bf16 %v188_v45, %v186_v44  ;;  %v202_v28 = vld [vmem:[%s4518_s0 + $0x5a0] sm:$0xff]  ;;  %v208_v41 = vld [vmem:[%s4518_s0 + $0x5d0] sm:$0xff]  ;;  %v111_v45 = vld [vmem:[%s4518_s0 + $0x2c8] sm:$0xff] }
  0x49   :  { %1026 = vmatmul.mubr.bf16.gmra.mrb[8].mxu1 %v290_v48  ;;  %v88_v48 = vld [vmem:[%s4518_s0 + $0x210] sm:$0xff]  ;;  %v206_v40 = vld [vmem:[%s4518_s0 + $0x5c0] sm:$0xff] }
  0x4a   :  { %2254 = vmatprep.mubr.msk.bf16.mxu1 %vm478_vm0, %v293_v57  ;;  %v192_v57 = vld [vmem:[%s4518_s0 + $0x550] sm:$0xff] }
  0x4b   :  { %v108_v44 = vld [vmem:[%s4518_s0 + $0x2b0] sm:$0xff] }
  0x4e   :  { %696 = vmatmul.mubr.bf16.gmra.mrb[12].mxu0 %v224_v53  ;;  %v71_v53 = vld [vmem:[%s4518_s0 + $0x188] sm:$0xff] }
  0x4f   :  { %2221 = vmatprep.mubr.msk.bf16.mxu0 %vm478_vm0, %v227_v54  ;;  %v73_v54 = vld [vmem:[%s4518_s0 + $0x198] sm:$0xff] }
  0x50   :  { %v243_v62 = vpack.c.bf16 %v73_v54, %v71_v53  ;;  %v193_v53 = vld [vmem:[%s4518_s0 + $0x558] sm:$0xff] }
  0x56   :  { %706 = vmatmul.mubr.bf16.gmra.mrb[16].mxu0 %v226_v59  ;;  %v172_v59 = vld [vmem:[%s4518_s0 + $0x4b0] sm:$0xff] }
  0x57   :  { %2222 = vmatprep.mubr.msk.bf16.mxu0 %vm478_vm0, %v229_v60  ;;  %v240_v60 = vpack.c.bf16 %v68_v52, %v66_v51  ;;  %v292_v61 = vpack.c.bf16 %v172_v59, %v170_v58  ;;  %v250_v51 = vpack.c.bf16 %v88_v48, %v86_v47  ;;  %v191_v52 = vld [vmem:[%s4518_s0 + $0x548] sm:$0xff]  ;;  %v302_v58 = vpack.c.bf16 %v192_v57, %v190_v56  ;;  %v90_v59 = vld [vmem:[%s4518_s0 + $0x220] sm:$0xff]  ;;  %v112_v56 = vld [vmem:[%s4518_s0 + $0x2d0] sm:$0xff] }
  0x58   :  { %v303_v55 = vpack.c.bf16 %v193_v53, %v191_v52  ;;  %v211_v48 = vld [vmem:[%s4518_s0 + $0x5e8] sm:$0xff]  ;;  %v210_v52 = vld [vmem:[%s4518_s0 + $0x5e0] sm:$0xff]  ;;  %v212_v53 = vld [vmem:[%s4518_s0 + $0x5f0] sm:$0xff] }
  0x59   :  { %1036 = vmatmul.mubr.bf16.gmra.mrb[12].mxu1 %v292_v61  ;;  %v95_v61 = vld [vmem:[%s4518_s0 + $0x248] sm:$0xff] }
  0x5a   :  { %2255 = vmatprep.mubr.msk.bf16.mxu1 %vm478_vm0, %v295_v5  ;;  %v196_v5 = vld [vmem:[%s4518_s0 + $0x570] sm:$0xff]  ;;  %v115_v57 = vld [vmem:[%s4518_s0 + $0x2e8] sm:$0xff] }
  0x5e   :  { %716 = vmatmul.mubr.bf16.gmra.mrb[20].mxu0 %v228_v1  ;;  %v75_v1 = vld [vmem:[%s4518_s0 + $0x1a8] sm:$0xff] }
  0x5f   :  { %2223 = vmatprep.mubr.msk.bf16.mxu0 %vm478_vm0, %v231_v2  ;;  %v77_v2 = vld [vmem:[%s4518_s0 + $0x1b8] sm:$0xff] }
  0x60   :  { %v245_v10 = vpack.c.bf16 %v77_v2, %v75_v1  ;;  %v197_v1 = vld [vmem:[%s4518_s0 + $0x578] sm:$0xff] }
  0x66   :  { %726 = vmatmul.mubr.bf16.gmra.mrb[24].mxu0 %v230_v7  ;;  %v176_v7 = vld [vmem:[%s4518_s0 + $0x4d0] sm:$0xff] }
  0x67   :  { %2224 = vmatprep.mubr.msk.bf16.mxu0 %vm478_vm0, %v233_v8  ;;  %v242_v8 = vpack.c.bf16 %v72_v0, %v70_v63  ;;  %v294_v9 = vpack.c.bf16 %v176_v7, %v174_v6  ;;  %v195_v0 = vld [vmem:[%s4518_s0 + $0x568] sm:$0xff]  ;;  %v304_v6 = vpack.c.bf16 %v196_v5, %v194_v4  ;;  %v94_v7 = vld [vmem:[%s4518_s0 + $0x240] sm:$0xff]  ;;  %v116_v4 = vld [vmem:[%s4518_s0 + $0x2f0] sm:$0xff] }
  0x68   :  { %v305_v3 = vpack.c.bf16 %v197_v1, %v195_v0  ;;  %v214_v0 = vld [vmem:[%s4518_s0 + $0x600] sm:$0xff]  ;;  %v216_v1 = vld [vmem:[%s4518_s0 + $0x610] sm:$0x1]  ;;  %v119_v5 = vld [vmem:[%s4518_s0 + $0x308] sm:$0xff] }
  0x69   :  { %1046 = vmatmul.mubr.bf16.gmra.mrb[16].mxu1 %v294_v9  ;;  %v99_v9 = vld [vmem:[%s4518_s0 + $0x268] sm:$0xff] }
  0x6a   :  { %2256 = vmatprep.mubr.msk.bf16.mxu1 %vm478_vm0, %v297_v19  ;;  %v98_v19 = vld [vmem:[%s4518_s0 + $0x260] sm:$0xff] }
  0x6b   :  { %v256_v23 = vpack.c.bf16 %v100_v20, %v98_v19 }
  0x6e   :  { %736 = vmatmul.mubr.bf16.gmra.mrb[28].mxu0 %v232_v13  ;;  %v79_v13 = vld [vmem:[%s4518_s0 + $0x1c8] sm:$0xff] }
  0x6f   :  { %2225 = vmatprep.mubr.msk.bf16.mxu0 %vm478_vm0, %v235_v14  ;;  %v81_v14 = vld [vmem:[%s4518_s0 + $0x1d8] sm:$0xff] }
  0x70   :  { %v247_v18 = vpack.c.bf16 %v81_v14, %v79_v13  ;;  %v201_v13 = vld [vmem:[%s4518_s0 + $0x598] sm:$0xff] }
  0x71   :  { %1056 = vmatmul.mubr.bf16.gmra.mrb[20].mxu1 %v296_v22  ;;  %v105_v22 = vld [vmem:[%s4518_s0 + $0x298] sm:$0xff] }
  0x72   :  { %2257 = vmatprep.mubr.msk.bf16.mxu1 %vm478_vm0, %v299_v31  ;;  %v102_v31 = vld [vmem:[%s4518_s0 + $0x280] sm:$0xff] }
  0x73   :  { %v258_v35 = vpack.c.bf16 %v104_v32, %v102_v31  ;;  %v130_v32 = vld [vmem:[%s4518_s0 + $0x360] sm:$0xff] }
  0x76   :  { %746 = vmatmul.mubr.bf16.gmra.mrb[32].mxu0 %v234_v25  ;;  %v83_v25 = vld [vmem:[%s4518_s0 + $0x1e8] sm:$0xff] }
  0x77   :  { %2226 = vmatprep.mubr.msk.bf16.mxu0 %vm478_vm0, %v237_v26  ;;  %v85_v26 = vld [vmem:[%s4518_s0 + $0x1f8] sm:$0xff] }
  0x78   :  { %v249_v30 = vpack.c.bf16 %v85_v26, %v83_v25  ;;  %v205_v25 = vld [vmem:[%s4518_s0 + $0x5b8] sm:$0xff]  ;;  %v259_v26 = vpack.c.bf16 %v105_v22, %v103_v21  ;;  %v343_v21 = vlaneseq  ;;  %v126_v22 = vld [vmem:[%s4518_s0 + $0x340] sm:$0xff] }
  0x79   :  { %1066 = vmatmul.mubr.bf16.gmra.mrb[24].mxu1 %v298_v34  ;;  %v109_v34 = vld [vmem:[%s4518_s0 + $0x2b8] sm:$0xff] }
  0x7a   :  { %2258 = vmatprep.mubr.msk.bf16.mxu1 %vm478_vm0, %v301_v43  ;;  %v106_v43 = vld [vmem:[%s4518_s0 + $0x2a0] sm:$0xff] }
  0x7b   :  { %v260_v47 = vpack.c.bf16 %v108_v44, %v106_v43 }
  0x7e   :  { %756 = vmatmul.mubr.bf16.gmra.mrb[36].mxu0 %v236_v37  ;;  %v87_v37 = vld [vmem:[%s4518_s0 + $0x208] sm:$0xff] }
  0x7f   :  { %2227 = vmatprep.mubr.msk.bf16.mxu0 %vm478_vm0, %v239_v38  ;;  %v89_v38 = vld [vmem:[%s4518_s0 + $0x218] sm:$0xff] }
  0x80   :  { %v251_v42 = vpack.c.bf16 %v89_v38, %v87_v37  ;;  %v209_v37 = vld [vmem:[%s4518_s0 + $0x5d8] sm:$0xff]  ;;  %v261_v38 = vpack.c.bf16 %v109_v34, %v107_v33  ;;  %v132_v33 = vld [vmem:[%s4518_s0 + $0x370] sm:$0xff]  ;;  %v135_v34 = vld [vmem:[%s4518_s0 + $0x388] sm:$0xff] }
  0x81   :  { %1076 = vmatmul.mubr.bf16.gmra.mrb[28].mxu1 %v300_v46  ;;  %v113_v46 = vld [vmem:[%s4518_s0 + $0x2d8] sm:$0xff] }
  0x82   :  { %2259 = vmatprep.mubr.msk.bf16.mxu1 %vm478_vm0, %v303_v55  ;;  %v110_v55 = vld [vmem:[%s4518_s0 + $0x2c0] sm:$0xff] }
  0x86   :  { %766 = vmatmul.mubr.bf16.gmra.mrb[40].mxu0 %v238_v49  ;;  %v91_v49 = vld [vmem:[%s4518_s0 + $0x228] sm:$0xff] }
  0x87   :  { %2228 = vmatprep.mubr.msk.bf16.mxu0 %vm478_vm0, %v241_v50  ;;  %v93_v50 = vld [vmem:[%s4518_s0 + $0x238] sm:$0xff] }
  0x88   :  { %v253_v54 = vpack.c.bf16 %v93_v50, %v91_v49  ;;  %v213_v49 = vld [vmem:[%s4518_s0 + $0x5f8] sm:$0xff]  ;;  %v263_v50 = vpack.c.bf16 %v113_v46, %v111_v45 }
  0x89   :  { %1086 = vmatmul.mubr.bf16.gmra.mrb[32].mxu1 %v302_v58  ;;  %v117_v58 = vld [vmem:[%s4518_s0 + $0x2f8] sm:$0xff] }
  0x8a   :  { %2260 = vmatprep.mubr.msk.bf16.mxu1 %vm478_vm0, %v305_v3  ;;  %v114_v3 = vld [vmem:[%s4518_s0 + $0x2e0] sm:$0xff] }
  0x8e   :  { %776 = vmatmul.mubr.bf16.gmra.mrb[44].mxu0 %v240_v60  ;;  %v92_v60 = vld [vmem:[%s4518_s0 + $0x230] sm:$0xff] }
  0x8f   :  { %2229 = vmatprep.mubr.msk.bf16.mxu0 %vm478_vm0, %v243_v62  ;;  %v97_v62 = vld [vmem:[%s4518_s0 + $0x258] sm:$0xff]  ;;  %v252_v63 = vpack.c.bf16 %v92_v60, %v90_v59  ;;  %v262_v59 = vpack.c.bf16 %v112_v56, %v110_v55  ;;  %v265_v60 = vpack.c.bf16 %v117_v58, %v115_v57 }
  0x90   :  { %v255_v2 = vpack.c.bf16 %v97_v62, %v95_v61  ;;  %v215_v61 = vld [vmem:[%s4518_s0 + $0x608] sm:$0xff]  ;;  %v217_v62 = vld [vmem:[%s4518_s0 + $0x618] sm:$0x1] }
  0x91   :  { %1096 = vmatmul.mubr.bf16.gmra.mrb[36].mxu1 %v304_v6  ;;  %v121_v6 = vld [vmem:[%s4518_s0 + $0x318] sm:$0xff] }
  0x96   :  { %786 = vmatmul.mubr.bf16.gmra.mrb[48].mxu0 %v242_v8  ;;  %v96_v8 = vld [vmem:[%s4518_s0 + $0x250] sm:$0xff] }
  0x97   :  { %2230 = vmatprep.mubr.msk.bf16.mxu0 %vm478_vm0, %v245_v10  ;;  %v101_v10 = vld [vmem:[%s4518_s0 + $0x278] sm:$0xff]  ;;  %v254_v11 = vpack.c.bf16 %v96_v8, %v94_v7  ;;  %v264_v7 = vpack.c.bf16 %v116_v4, %v114_v3  ;;  %v267_v8 = vpack.c.bf16 %v121_v6, %v119_v5 }
  0x98   :  { %v257_v14 = vpack.c.bf16 %v101_v10, %v99_v9  ;;  %v118_v9 = vld [vmem:[%s4518_s0 + $0x300] sm:$0xff]  ;;  %v120_v10 = vld [vmem:[%s4518_s0 + $0x310] sm:$0xff] }
  0x9e   :  { %796 = vmatmul.mubr.bf16.gmra.mrb[52].mxu0 %v244_v15  ;;  %v307_v15 = vpack.c.bf16 %v201_v13, %v199_v12  ;;  %v125_v12 = vld [vmem:[%s4518_s0 + $0x338] sm:$0xff]  ;;  %v266_v13 = vpack.c.bf16 %v120_v10, %v118_v9 }
  0x9f   :  { %2231 = vmatprep.mubr.msk.bf16.mxu0 %vm478_vm0, %v247_v18  ;;  %v306_v18 = vpack.c.bf16 %v200_v17, %v198_v16  ;;  %v124_v16 = vld [vmem:[%s4518_s0 + $0x330] sm:$0xff]  ;;  %v127_v17 = vld [vmem:[%s4518_s0 + $0x348] sm:$0xff] }
  0xa0   :  { %2261 = vmatprep.mubr.msk.bf16.mxu1 %vm478_vm0, %v307_v15  ;;  %v122_v15 = vld [vmem:[%s4518_s0 + $0x320] sm:$0xff] }
  0xa1   :  { %1106 = vmatmul.mubr.bf16.gmra.mrb[40].mxu1 %v306_v18  ;;  %v129_v18 = vld [vmem:[%s4518_s0 + $0x358] sm:$0xff]  ;;  %v268_v19 = vpack.c.bf16 %v124_v16, %v122_v15 }
  0xa2   :  { %v271_v20 = vpack.c.bf16 %v129_v18, %v127_v17 }
  0xa6   :  { %806 = vmatmul.mubr.bf16.gmra.mrb[56].mxu0 %v246_v27  ;;  %v309_v27 = vpack.c.bf16 %v205_v25, %v203_v24  ;;  %v344_v24 = vshrl.u32 %v343_v21, 7  ;;  %v131_v25 = vld [vmem:[%s4518_s0 + $0x368] sm:$0xff] }
  0xa7   :  { %2232 = vmatprep.mubr.msk.bf16.mxu0 %vm478_vm0, %v249_v30  ;;  %v308_v30 = vpack.c.bf16 %v204_v29, %v202_v28  ;;  %v147_v21 = vld [vmem:[%s4518_s0 + $0x3e8] sm:$0xff] }
  0xa8   :  { %2262 = vmatprep.mubr.msk.bf16.mxu1 %vm478_vm0, %v309_v27  ;;  %v349_v28 = vsub.s32 1, %v344_v24  ;;  %v345_v45 = vsub.s32 0, %v344_v24 }
  0xa9   :  { %1116 = vmatmul.mubr.bf16.gmra.mrb[44].mxu1 %v308_v30  ;;  %v341_v30 = vld [vmem:[%s4520_s2] sm:$0x3] }
  0xaa   :  { %v3772_v31 = vrot.slane %v341_v30, %v349_v28 }
  0xae   :  { %816 = vmatmul.mubr.bf16.gmra.mrb[60].mxu0 %v248_v39  ;;  %v311_v39 = vpack.c.bf16 %v209_v37, %v207_v36 }
  0xaf   :  { %2233 = vmatprep.mubr.msk.bf16.mxu0 %vm478_vm0, %v251_v42  ;;  %v310_v42 = vpack.c.bf16 %v208_v41, %v206_v40 }
  0xb0   :  { %2263 = vmatprep.mubr.msk.bf16.mxu1 %vm478_vm0, %v311_v39 }
  0xb1   :  { %1126 = vmatmul.mubr.bf16.gmra.mrb[48].mxu1 %v310_v42 }
  0xb6   :  { %826 = vmatmul.mubr.bf16.gmra.mrb[64].mxu0 %v250_v51  ;;  %v313_v51 = vpack.c.bf16 %v213_v49, %v211_v48  ;;  %v136_v48 = vld [vmem:[%s4518_s0 + $0x390] sm:$0xff]  ;;  %v139_v49 = vld [vmem:[%s4518_s0 + $0x3a8] sm:$0xff] }
  0xb7   :  { %2234 = vmatprep.mubr.msk.bf16.mxu0 %vm478_vm0, %v253_v54  ;;  %v312_v54 = vpack.c.bf16 %v212_v53, %v210_v52 }
  0xb8   :  { %2264 = vmatprep.mubr.msk.bf16.mxu1 %vm478_vm0, %v313_v51 }
  0xb9   :  { %1136 = vmatmul.mubr.bf16.gmra.mrb[52].mxu1 %v312_v54  ;;  %v3802_v54 = vrot.slane %v341_v30, %v345_v45 }
  0xbe   :  { %836 = vmatmul.mubr.bf16.gmra.mrb[68].mxu0 %v252_v63  ;;  %v315_v63 = vpack.c.bf16 %v217_v62, %v215_v61 }
  0xbf   :  { %2235 = vmatprep.mubr.msk.bf16.mxu0 %vm478_vm0, %v255_v2  ;;  %v314_v2 = vpack.c.bf16 %v216_v1, %v214_v0  ;;  %v140_v0 = vld [vmem:[%s4518_s0 + $0x3b0] sm:$0xff]  ;;  %v143_v1 = vld [vmem:[%s4518_s0 + $0x3c8] sm:$0xff] }
  0xc0   :  { %2265 = vmatprep.mubr.msk.bf16.mxu1 %vm478_vm0, %v315_v63  ;;  %v138_v63 = vld [vmem:[%s4518_s0 + $0x3a0] sm:$0xff] }
  0xc1   :  { %1146 = vmatmul.mubr.bf16.gmra.mrb[56].mxu1 %v314_v2  ;;  %v145_v2 = vld [vmem:[%s4518_s0 + $0x3d8] sm:$0xff] }
  0xc6   :  { %846 = vmatmul.mubr.bf16.gmra.mrb[72].mxu0 %v254_v11  ;;  %v123_v11 = vld [vmem:[%s4518_s0 + $0x328] sm:$0xff] }
  0xc7   :  { %2236 = vmatprep.mubr.msk.bf16.mxu0 %vm478_vm0, %v257_v14  ;;  %v269_v14 = vpack.c.bf16 %v125_v12, %v123_v11  ;;  %v279_v12 = vpack.c.bf16 %v145_v2, %v143_v1 }
  0xce   :  { %856 = vmatmul.mubr.bf16.gmra.mrb[76].mxu0 %v256_v23  ;;  %v128_v23 = vld [vmem:[%s4518_s0 + $0x350] sm:$0xff] }
  0xcf   :  { %2237 = vmatprep.mubr.msk.bf16.mxu0 %vm478_vm0, %v259_v26  ;;  %v133_v26 = vld [vmem:[%s4518_s0 + $0x378] sm:$0xff]  ;;  %v270_v27 = vpack.c.bf16 %v128_v23, %v126_v22 }
  0xd0   :  { %v273_v29 = vpack.c.bf16 %v133_v26, %v131_v25  ;;  %v149_v22 = vld [vmem:[%s4518_s0 + $0x3f8] sm:$0xff] }
  0xd6   :  { %866 = vmatmul.mubr.bf16.gmra.mrb[80].mxu0 %v258_v35  ;;  %v137_v35 = vld [vmem:[%s4518_s0 + $0x398] sm:$0xff] }
  0xd7   :  { %2238 = vmatprep.mubr.msk.bf16.mxu0 %vm478_vm0, %v261_v38  ;;  %v272_v38 = vpack.c.bf16 %v132_v33, %v130_v32  ;;  %v275_v41 = vpack.c.bf16 %v137_v35, %v135_v34  ;;  %v281_v33 = vpack.c.bf16 %v149_v22, %v147_v21 }
  0xde   :  { %876 = vmatmul.mubr.bf16.gmra.mrb[84].mxu0 %v260_v47  ;;  %v134_v47 = vld [vmem:[%s4518_s0 + $0x380] sm:$0xff] }
  0xdf   :  { %2239 = vmatprep.mubr.msk.bf16.mxu0 %vm478_vm0, %v263_v50  ;;  %v141_v50 = vld [vmem:[%s4518_s0 + $0x3b8] sm:$0xff]  ;;  %v274_v53 = vpack.c.bf16 %v136_v48, %v134_v47  ;;  %v151_v47 = vld [vmem:[%s4518_s0 + $0x408] sm:$0xff] }
  0xe0   :  { %v277_v57 = vpack.c.bf16 %v141_v50, %v139_v49  ;;  %v153_v48 = vld [vmem:[%s4518_s0 + $0x418] sm:$0xff] }
  0xe6   :  { %886 = vmatmul.mubr.bf16.gmra.mrb[88].mxu0 %v262_v59 }
  0xe7   :  { %2240 = vmatprep.mubr.msk.bf16.mxu0 %vm478_vm0, %v265_v60 }
  0xee   :  { %896 = vmatmul.mubr.bf16.gmra.mrb[92].mxu0 %v264_v7 }
  0xef   :  { %2241 = vmatprep.mubr.msk.bf16.mxu0 %vm478_vm0, %v267_v8  ;;  %v276_v8 = vpack.c.bf16 %v140_v0, %v138_v63 }
  0xf6   :  { %906 = vmatmul.mubr.bf16.gmra.mrb[96].mxu0 %v266_v13 }
  0xf7   :  { %2242 = vmatprep.mubr.msk.bf16.mxu0 %vm478_vm0, %v269_v14 }
  0xfe   :  { %916 = vmatmul.mubr.bf16.gmra.mrb[100].mxu0 %v268_v19  ;;  %v142_v19 = vld [vmem:[%s4518_s0 + $0x3c0] sm:$0xff] }
  0xff   :  { %2243 = vmatprep.mubr.msk.bf16.mxu0 %vm478_vm0, %v271_v20  ;;  %v144_v20 = vld [vmem:[%s4518_s0 + $0x3d0] sm:$0xff] }
 0x100   :  { %v278_v28 = vpack.c.bf16 %v144_v20, %v142_v19 }
 0x106   :  { %926 = vmatmul.mubr.bf16.gmra.mrb[104].mxu0 %v270_v27 }
 0x107   :  { %2244 = vmatprep.mubr.msk.bf16.mxu0 %vm478_vm0, %v273_v29 }
 0x109   :  { %v667_v36 = vpop.f32.mrb[0].mxu0 }
 0x10a   :  { %v669_v37 = vpop.f32.mrb[1].mxu0  ;;  %v668_v61 = vadd.f32 %v667_v36, %v3802_v54 }
 0x10b   :  { %v670_v39 = vadd.f32 %v669_v37, %v3772_v31  ;;  %v671_v40 = vpop.f32.mrb[2].mxu0 }
 0x10c   :  { %v673_v42 = vpop.f32.mrb[3].mxu0  ;;  %v672_v4 = vadd.f32 %v671_v40, %v3802_v54 }
 0x10d   :  { %v2266_v43 = vmul.f32 -1.442695, %v670_v39  ;;  %v674_v44 = vadd.f32 %v673_v42, %v3772_v31 }
 0x10e   :  { %936 = vmatmul.mubr.bf16.gmra.mrb[108].mxu0 %v272_v38 }
 0x10f   :  { %2495 = vpow2.f32 %v2266_v43  ;;  %v2267_v46 = vmul.f32 -1.442695, %v674_v44  ;;  %2245 = vmatprep.mubr.msk.bf16.mxu0 %vm478_vm0, %v275_v41  ;;  %v146_v43 = vld [vmem:[%s4518_s0 + $0x3e0] sm:$0xff]  ;;  %v148_v44 = vld [vmem:[%s4518_s0 + $0x3f0] sm:$0xff] }
 0x111   :  { %2497 = vpow2.f32 %v2267_v46  ;;  %v677_v51 = vpop.f32.mrb[4].mxu0 }
 0x112   :  { %v679_v52 = vpop.f32.mrb[5].mxu0  ;;  %v678_v17 = vadd.f32 %v677_v51, %v3802_v54 }
 0x113   :  { %v680_v55 = vadd.f32 %v679_v52, %v3772_v31  ;;  %v681_v56 = vpop.f32.mrb[6].mxu0 }
 0x114   :  { %v683_v58 = vpop.f32.mrb[7].mxu0  ;;  %v682_v24 = vadd.f32 %v681_v56, %v3802_v54  ;;  %v280_v56 = vpack.c.bf16 %v148_v44, %v146_v43 }
 0x115   :  { %v2268_v59 = vmul.f32 -1.442695, %v680_v55  ;;  %v684_v60 = vadd.f32 %v683_v58, %v3772_v31 }
 0x116   :  { %946 = vmatmul.mubr.bf16.gmra.mrb[112].mxu0 %v274_v53 }
 0x117   :  { %2499 = vpow2.f32 %v2268_v59  ;;  %v2269_v62 = vmul.f32 -1.442695, %v684_v60  ;;  %2246 = vmatprep.mubr.msk.bf16.mxu0 %vm478_vm0, %v277_v57  ;;  %v283_v60 = vpack.c.bf16 %v153_v48, %v151_v47 }
 0x119   :  { %v2496_v3 = vpop.eup %2495  ;;  %2501 = vpow2.f32 %v2269_v62  ;;  %v687_v5 = vpop.f32.mrb[8].mxu0 }
 0x11a   :  { %v1548_v6 = vadd.f32 1.0, %v2496_v3  ;;  %v689_v7 = vpop.f32.mrb[9].mxu0  ;;  %2503 = vtanh.f32 %v668_v61  ;;  %v688_v41 = vadd.f32 %v687_v5, %v3802_v54 }
 0x11b   :  { %v2498_v9 = vpop.eup %2497  ;;  %v690_v10 = vadd.f32 %v689_v7, %v3772_v31  ;;  %v691_v11 = vpop.f32.mrb[10].mxu0  ;;  %v150_v7 = vld [vmem:[%s4518_s0 + $0x400] sm:$0xff] }
 0x11c   :  { %2505 = vrcp.f32 %v1548_v6  ;;  %v1549_v13 = vadd.f32 1.0, %v2498_v9  ;;  %v693_v14 = vpop.f32.mrb[11].mxu0  ;;  %v692_v50 = vadd.f32 %v691_v11, %v3802_v54  ;;  %v155_v11 = vld [vmem:[%s4518_s0 + $0x428] sm:$0xff] }
 0x11d   :  { %2507 = vtanh.f32 %v672_v4  ;;  %v2270_v15 = vmul.f32 -1.442695, %v690_v10  ;;  %v694_v16 = vadd.f32 %v693_v14, %v3772_v31 }
 0x11e   :  { %2509 = vrcp.f32 %v1549_v13  ;;  %956 = vmatmul.mubr.bf16.gmra.mrb[116].mxu0 %v276_v8  ;;  %v152_v8 = vld [vmem:[%s4518_s0 + $0x410] sm:$0xff] }
 0x11f   :  { %2511 = vpow2.f32 %v2270_v15  ;;  %v2271_v18 = vmul.f32 -1.442695, %v694_v16  ;;  %2247 = vmatprep.mubr.msk.bf16.mxu0 %vm478_vm0, %v279_v12  ;;  %v157_v12 = vld [vmem:[%s4518_s0 + $0x438] sm:$0xff]  ;;  %v282_v19 = vpack.c.bf16 %v152_v8, %v150_v7 }
 0x121   :  { %v2500_v23 = vpop.eup %2499  ;;  %2513 = vpow2.f32 %v2271_v18  ;;  %v697_v25 = vpop.f32.mrb[12].mxu0 }
 0x122   :  { %v1550_v26 = vadd.f32 1.0, %v2500_v23  ;;  %v699_v27 = vpop.f32.mrb[13].mxu0  ;;  %2515 = vtanh.f32 %v678_v17  ;;  %v698_v5 = vadd.f32 %v697_v25, %v3802_v54  ;;  %v285_v23 = vpack.c.bf16 %v157_v12, %v155_v11 }
 0x123   :  { %v2502_v29 = vpop.eup %2501  ;;  %v700_v30 = vadd.f32 %v699_v27, %v3772_v31  ;;  %v701_v32 = vpop.f32.mrb[14].mxu0 }
 0x124   :  { %2517 = vrcp.f32 %v1550_v26  ;;  %v1551_v34 = vadd.f32 1.0, %v2502_v29  ;;  %v703_v35 = vpop.f32.mrb[15].mxu0  ;;  %v2504_v36 = vpop.eup %2503  ;;  %v702_v14 = vadd.f32 %v701_v32, %v3802_v54 }
 0x125   :  { %2519 = vtanh.f32 %v682_v24  ;;  %v2272_v37 = vmul.f32 -1.442695, %v700_v30  ;;  %v704_v38 = vadd.f32 %v703_v35, %v3772_v31  ;;  %v154_v35 = vld [vmem:[%s4518_s0 + $0x420] sm:$0xff] }
 0x126   :  { %v2506_v39 = vpop.eup %2505  ;;  %2521 = vrcp.f32 %v1551_v34  ;;  %966 = vmatmul.mubr.bf16.gmra.mrb[120].mxu0 %v278_v28 }
 0x127   :  { %v2508_v40 = vpop.eup %2507  ;;  %2523 = vpow2.f32 %v2272_v37  ;;  %v2273_v42 = vmul.f32 -1.442695, %v704_v38  ;;  %2248 = vmatprep.mubr.msk.bf16.mxu0 %vm478_vm0, %v281_v33  ;;  %v3848_v45 = vmul.f32 %v2506_v39, %v2504_v36  ;;  %v156_v36 = vld [vmem:[%s4518_s0 + $0x430] sm:$0xff] }
 0x128   :  { %v2510_v46 = vpop.eup %2509 }
 0x129   :  { %v2512_v49 = vpop.eup %2511  ;;  %2525 = vpow2.f32 %v2273_v42  ;;  %v707_v51 = vpop.f32.mrb[16].mxu0  ;;  %v3857_v52 = vmul.f32 %v2510_v46, %v2508_v40  ;;  %v284_v46 = vpack.c.bf16 %v156_v36, %v154_v35 }
 0x12a   :  { %v1552_v53 = vadd.f32 1.0, %v2512_v49  ;;  %v709_v55 = vpop.f32.mrb[17].mxu0  ;;  %2527 = vtanh.f32 %v688_v41  ;;  %v708_v33 = vadd.f32 %v707_v51, %v3802_v54 }
 0x12b   :  { %v2514_v57 = vpop.eup %2513  ;;  %v710_v58 = vadd.f32 %v709_v55, %v3772_v31  ;;  %v711_v59 = vpop.f32.mrb[18].mxu0  ;;  %v1941_v61 = vpack.c.bf16 %v3857_v52, %v3848_v45 }
 0x12c   :  { %2529 = vrcp.f32 %v1552_v53  ;;  %v1553_v62 = vadd.f32 1.0, %v2514_v57  ;;  %v713_v63 = vpop.f32.mrb[19].mxu0  ;;  %v2516_v0 = vpop.eup %2515  ;;  %v712_v40 = vadd.f32 %v711_v59, %v3802_v54 }
 0x12d   :  { %2531 = vtanh.f32 %v692_v50  ;;  %v2274_v1 = vmul.f32 -1.442695, %v710_v58  ;;  %v714_v2 = vadd.f32 %v713_v63, %v3772_v31 }
 0x12e   :  { %v2518_v3 = vpop.eup %2517  ;;  %2533 = vrcp.f32 %v1553_v62  ;;  %976 = vmatmul.mubr.bf16.gmra.mrb[124].mxu0 %v280_v56 }
 0x12f   :  { %v2520_v4 = vpop.eup %2519  ;;  %2535 = vpow2.f32 %v2274_v1  ;;  %v2275_v6 = vmul.f32 -1.442695, %v714_v2  ;;  %2249 = vmatprep.mubr.msk.bf16.mxu0 %vm478_vm0, %v283_v60  ;;  %v3871_v9 = vmul.f32 %v2518_v3, %v2516_v0 }
 0x130   :  { %v2522_v10 = vpop.eup %2521 }
 0x131   :  { %v2524_v13 = vpop.eup %2523  ;;  %2537 = vpow2.f32 %v2275_v6  ;;  %v717_v15 = vpop.f32.mrb[20].mxu0  ;;  %v3880_v16 = vmul.f32 %v2522_v10, %v2520_v4 }
 0x132   :  { %v1554_v17 = vadd.f32 1.0, %v2524_v13  ;;  %v719_v18 = vpop.f32.mrb[21].mxu0  ;;  %2539 = vtanh.f32 %v698_v5  ;;  %v718_v60 = vadd.f32 %v717_v15, %v3802_v54 }
 0x133   :  { %v2526_v20 = vpop.eup %2525  ;;  %v720_v21 = vadd.f32 %v719_v18, %v3772_v31  ;;  %v721_v22 = vpop.f32.mrb[22].mxu0  ;;  %v1942_v24 = vpack.c.bf16 %v3880_v16, %v3871_v9 }
 0x134   :  { %2541 = vrcp.f32 %v1554_v17  ;;  %v1555_v25 = vadd.f32 1.0, %v2526_v20  ;;  %v723_v26 = vpop.f32.mrb[23].mxu0  ;;  %v2528_v27 = vpop.eup %2527  ;;  %v722_v2 = vadd.f32 %v721_v22, %v3802_v54 }
 0x135   :  { %2543 = vtanh.f32 %v702_v14  ;;  %v2276_v28 = vmul.f32 -1.442695, %v720_v21  ;;  %v724_v29 = vadd.f32 %v723_v26, %v3772_v31 }
 0x136   :  { %v2530_v30 = vpop.eup %2529  ;;  %2545 = vrcp.f32 %v1555_v25  ;;  %986 = vmatmul.mubr.bf16.gmra.mrb[128].mxu0 %v282_v19 }
 0x137   :  { %v2532_v32 = vpop.eup %2531  ;;  %2547 = vpow2.f32 %v2276_v28  ;;  %v2277_v34 = vmul.f32 -1.442695, %v724_v29  ;;  %2250 = vmatprep.mubr.msk.bf16.mxu0 %vm478_vm0, %v285_v23  ;;  %v3894_v37 = vmul.f32 %v2530_v30, %v2528_v27  ;;  %v3919_v29 = vpop.f32.mrb[0].mxu1 }
 0x138   :  { %v2534_v38 = vpop.eup %2533 }
 0x139   :  { %v2536_v39 = vpop.eup %2535  ;;  %2549 = vpow2.f32 %v2277_v34  ;;  %v727_v41 = vpop.f32.mrb[24].mxu0  ;;  %v3897_v42 = vmul.f32 %v2534_v38, %v2532_v32 }
 0x13a   :  { %v1556_v43 = vadd.f32 1.0, %v2536_v39  ;;  %v729_v44 = vpop.f32.mrb[25].mxu0  ;;  %2551 = vtanh.f32 %v708_v33  ;;  %v728_v20 = vadd.f32 %v727_v41, %v3802_v54  ;;  %v1009_v33 = vpop.f32.mrb[1].mxu1 }
 0x13b   :  { %v2538_v47 = vpop.eup %2537  ;;  %v730_v48 = vadd.f32 %v729_v44, %v3772_v31  ;;  %v731_v49 = vpop.f32.mrb[26].mxu0  ;;  %v1943_v50 = vpack.c.bf16 %v3897_v42, %v3894_v37 }
 0x13c   :  { %2553 = vrcp.f32 %v1556_v43  ;;  %v1557_v51 = vadd.f32 1.0, %v2538_v47  ;;  %v733_v53 = vpop.f32.mrb[27].mxu0  ;;  %v2540_v55 = vpop.eup %2539  ;;  %v732_v26 = vadd.f32 %v731_v49, %v3802_v54  ;;  %v1010_v49 = vadd.f32 %v1009_v33, %v3772_v31 }
 0x13d   :  { %2555 = vtanh.f32 %v712_v40  ;;  %v2278_v56 = vmul.f32 -1.442695, %v730_v48  ;;  %v734_v57 = vadd.f32 %v733_v53, %v3772_v31  ;;  %v3924_v39 = vpop.f32.mrb[2].mxu1 }
 0x13e   :  { %v2542_v58 = vpop.eup %2541  ;;  %2557 = vrcp.f32 %v1557_v51  ;;  %996 = vmatmul.mubr.bf16.gmra.mrb[132].mxu0 %v284_v46  ;;  %v1013_v44 = vpop.f32.mrb[3].mxu1 }
 0x13f   :  { %v2544_v59 = vpop.eup %2543  ;;  %2559 = vpow2.f32 %v2278_v56  ;;  %v2279_v62 = vmul.f32 -1.442695, %v734_v57  ;;  %v3904_v63 = vmul.f32 %v2542_v58, %v2540_v55  ;;  %v1014_v53 = vadd.f32 %v1013_v44, %v3772_v31 }
 0x140   :  { %v2546_v0 = vpop.eup %2545  ;;  %v2334_v58 = vmul.f32 -1.442695, %v1010_v49 }
 0x141   :  { %v2548_v1 = vpop.eup %2547  ;;  %2561 = vpow2.f32 %v2279_v62  ;;  %v737_v3 = vpop.f32.mrb[28].mxu0  ;;  %v3907_v4 = vmul.f32 %v2546_v0, %v2544_v59 }
 0x142   :  { %v1558_v5 = vadd.f32 1.0, %v2548_v1  ;;  %v739_v6 = vpop.f32.mrb[29].mxu0  ;;  %2563 = vtanh.f32 %v718_v60  ;;  %v738_v41 = vadd.f32 %v737_v3, %v3802_v54  ;;  %v2335_v60 = vmul.f32 -1.442695, %v1014_v53  ;;  %v3935_v3 = vpop.f32.mrb[4].mxu1 }
 0x143   :  { %v2550_v7 = vpop.eup %2549  ;;  %v740_v8 = vadd.f32 %v739_v6, %v3772_v31  ;;  %v741_v10 = vpop.f32.mrb[30].mxu0  ;;  %v1944_v11 = vpack.c.bf16 %v3907_v4, %v3904_v63 }
 0x144   :  { %2565 = vrcp.f32 %v1558_v5  ;;  %v1559_v12 = vadd.f32 1.0, %v2550_v7  ;;  %v743_v13 = vpop.f32.mrb[31].mxu0  ;;  %v2552_v14 = vpop.eup %2551  ;;  %v742_v0 = vadd.f32 %v741_v10, %v3802_v54 }
 0x145   :  { %2567 = vtanh.f32 %v722_v2  ;;  %v2280_v15 = vmul.f32 -1.442695, %v740_v8  ;;  %v744_v17 = vadd.f32 %v743_v13, %v3772_v31  ;;  %v3937_v7 = vpop.f32.mrb[5].mxu1 }
 0x146   :  { %v2554_v18 = vpop.eup %2553  ;;  %2569 = vrcp.f32 %v1559_v12  ;;  %v3942_v10 = vpop.f32.mrb[6].mxu1 }
 0x147   :  { %v2556_v19 = vpop.eup %2555  ;;  %2571 = vpow2.f32 %v2280_v15  ;;  %v2281_v21 = vmul.f32 -1.442695, %v744_v17  ;;  %v3914_v22 = vmul.f32 %v2554_v18, %v2552_v14 }
 0x148   :  { %v2558_v23 = vpop.eup %2557 }
 0x149   :  { %v2560_v25 = vpop.eup %2559  ;;  %2573 = vpow2.f32 %v2281_v21  ;;  %v747_v27 = vpop.f32.mrb[32].mxu0  ;;  %v3917_v28 = vmul.f32 %v2558_v23, %v2556_v19 }
 0x14a   :  { %v1560_v30 = vadd.f32 1.0, %v2560_v25  ;;  %v749_v32 = vpop.f32.mrb[33].mxu0  ;;  %2575 = vtanh.f32 %v728_v20  ;;  %v748_v17 = vadd.f32 %v747_v27, %v3802_v54  ;;  %v3945_v19 = vpop.f32.mrb[7].mxu1 }
 0x14b   :  { %v2562_v34 = vpop.eup %2561  ;;  %v750_v35 = vadd.f32 %v749_v32, %v3772_v31  ;;  %v751_v36 = vpop.f32.mrb[34].mxu0  ;;  %v1945_v38 = vpack.c.bf16 %v3917_v28, %v3914_v22 }
 0x14c   :  { %2577 = vrcp.f32 %v1560_v30  ;;  %v1561_v40 = vadd.f32 1.0, %v2562_v34  ;;  %v753_v43 = vpop.f32.mrb[35].mxu0  ;;  %v2564_v46 = vpop.eup %2563 }
 0x14d   :  { %2579 = vtanh.f32 %v732_v26  ;;  %v2282_v47 = vmul.f32 -1.442695, %v750_v35  ;;  %v754_v48 = vadd.f32 %v753_v43, %v3772_v31  ;;  %v752_v26 = vadd.f32 %v751_v36, %v3802_v54  ;;  %v3955_v44 = vpop.f32.mrb[8].mxu1 }
 0x14e   :  { %v2566_v51 = vpop.eup %2565  ;;  %2581 = vrcp.f32 %v1561_v40 }
 0x14f   :  { %v2568_v55 = vpop.eup %2567  ;;  %2583 = vpow2.f32 %v2282_v47  ;;  %v2283_v56 = vmul.f32 -1.442695, %v754_v48  ;;  %v3930_v57 = vmul.f32 %v2566_v51, %v2564_v46  ;;  %v3957_v48 = vpop.f32.mrb[9].mxu1 }
 0x150   :  { %v2570_v59 = vpop.eup %2569  ;;  %2585 = vtanh.f32 %v738_v41 }
 0x151   :  { %v2572_v62 = vpop.eup %2571  ;;  %2587 = vpow2.f32 %v2283_v56  ;;  %v757_v1 = vpop.f32.mrb[36].mxu0  ;;  %v3933_v2 = vmul.f32 %v2570_v59, %v2568_v55 }
 0x152   :  { %v1562_v5 = vadd.f32 1.0, %v2572_v62  ;;  %v759_v6 = vpop.f32.mrb[37].mxu0  ;;  %2589 = vpow2.f32 %v2334_v58  ;;  %v758_v32 = vadd.f32 %v757_v1, %v3802_v54  ;;  %v3962_v56 = vpop.f32.mrb[10].mxu1  ;;  %v1008_v62 = vadd.f32 %v3919_v29, %v3802_v54 }
 0x153   :  { %v2574_v8 = vpop.eup %2573  ;;  %v760_v12 = vadd.f32 %v759_v6, %v3772_v31  ;;  %v761_v13 = vpop.f32.mrb[38].mxu0  ;;  %v1946_v14 = vpack.c.bf16 %v3933_v2, %v3930_v57  ;;  %2591 = vpow2.f32 %v2335_v60 }
 0x154   :  { %2593 = vrcp.f32 %v1562_v5  ;;  %v1563_v15 = vadd.f32 1.0, %v2574_v8  ;;  %v763_v18 = vpop.f32.mrb[39].mxu0  ;;  %v2576_v20 = vpop.eup %2575  ;;  %v762_v40 = vadd.f32 %v761_v13, %v3802_v54 }
 0x155   :  { %2595 = vtanh.f32 %v742_v0  ;;  %v2284_v21 = vmul.f32 -1.442695, %v760_v12  ;;  %v764_v23 = vadd.f32 %v763_v18, %v3772_v31  ;;  %v3966_v0 = vpop.f32.mrb[11].mxu1  ;;  %v1012_v12 = vadd.f32 %v3924_v39, %v3802_v54 }
 0x156   :  { %v2578_v25 = vpop.eup %2577  ;;  %2597 = vrcp.f32 %v1563_v15 }
 0x157   :  { %v2580_v30 = vpop.eup %2579  ;;  %2599 = vpow2.f32 %v2284_v21  ;;  %v2285_v33 = vmul.f32 -1.442695, %v764_v23  ;;  %v3950_v34 = vmul.f32 %v2578_v25, %v2576_v20 }
 0x158   :  { %v2582_v27 = vpop.eup %2581  ;;  %2601 = vtanh.f32 %v748_v17 }
 0x159   :  { %v2584_v35 = vpop.eup %2583  ;;  %2603 = vpow2.f32 %v2285_v33  ;;  %v767_v41 = vpop.f32.mrb[40].mxu0  ;;  %v3953_v43 = vmul.f32 %v2582_v27, %v2580_v30 }
 0x15a   :  { %v2586_v46 = vpop.eup %2585  ;;  %v1564_v36 = vadd.f32 1.0, %v2584_v35  ;;  %2605 = vtanh.f32 %v752_v26  ;;  %v769_v47 = vpop.f32.mrb[41].mxu0 }
 0x15b   :  { %v2588_v49 = vpop.eup %2587  ;;  %2607 = vtanh.f32 %v758_v32  ;;  %v770_v51 = vadd.f32 %v769_v47, %v3772_v31  ;;  %v771_v53 = vpop.f32.mrb[42].mxu0 }
 0x15c   :  { %v2590_v58 = vpop.eup %2589  ;;  %2609 = vrcp.f32 %v1564_v36  ;;  %v1565_v59 = vadd.f32 1.0, %v2588_v49  ;;  %v773_v60 = vpop.f32.mrb[43].mxu0  ;;  %v1020_v36 = vadd.f32 %v3937_v7, %v3772_v31 }
 0x15d   :  { %v2592_v1 = vpop.eup %2591  ;;  %2611 = vtanh.f32 %v762_v40  ;;  %v2286_v5 = vmul.f32 -1.442695, %v770_v51  ;;  %v774_v6 = vadd.f32 %v773_v60, %v3772_v31  ;;  %v1616_v18 = vadd.f32 1.0, %v2590_v58  ;;  %v3975_v26 = vpop.f32.mrb[12].mxu1 }
 0x15e   :  { %v2594_v8 = vpop.eup %2593  ;;  %2613 = vrcp.f32 %v1565_v59  ;;  %v1617_v25 = vadd.f32 1.0, %v2592_v1  ;;  %v3977_v39 = vpop.f32.mrb[13].mxu1  ;;  %v768_v58 = vadd.f32 %v767_v41, %v3802_v54  ;;  %v1038_v57 = vadd.f32 %v3975_v26, %v3802_v54 }
 0x15f   :  { %v2596_v13 = vpop.eup %2595  ;;  %2615 = vpow2.f32 %v2286_v5  ;;  %v2287_v15 = vmul.f32 -1.442695, %v774_v6  ;;  %v3971_v17 = vmul.f32 %v2594_v8, %v2586_v46  ;;  %v3984_v47 = vpop.f32.mrb[14].mxu1  ;;  %v772_v8 = vadd.f32 %v771_v53, %v3802_v54 }
 0x160   :  { %v2598_v20 = vpop.eup %2597  ;;  %2617 = vtanh.f32 %v1008_v62  ;;  %v3987_v60 = vpop.f32.mrb[15].mxu1 }
 0x161   :  { %v2600_v29 = vpop.eup %2599  ;;  %2619 = vpow2.f32 %v2287_v15  ;;  %v777_v21 = vpop.f32.mrb[44].mxu0  ;;  %v3973_v23 = vmul.f32 %v2598_v20, %v2596_v13  ;;  %v2336_v15 = vmul.f32 -1.442695, %v1020_v36 }
 0x162   :  { %v2602_v30 = vpop.eup %2601  ;;  %v1566_v32 = vadd.f32 1.0, %v2600_v29  ;;  %v779_v33 = vpop.f32.mrb[45].mxu0  ;;  %2621 = vtanh.f32 %v1012_v12  ;;  %v778_v20 = vadd.f32 %v777_v21, %v3802_v54  ;;  %v1024_v21 = vadd.f32 %v3945_v19, %v3772_v31 }
 0x163   :  { %v2604_v27 = vpop.eup %2603  ;;  %v780_v35 = vadd.f32 %v779_v33, %v3772_v31  ;;  %v781_v40 = vpop.f32.mrb[46].mxu0  ;;  %2623 = vrcp.f32 %v1616_v18 }
 0x164   :  { %v2606_v49 = vpop.eup %2605  ;;  %2625 = vrcp.f32 %v1566_v32  ;;  %v1567_v51 = vadd.f32 1.0, %v2604_v27  ;;  %v783_v59 = vpop.f32.mrb[47].mxu0 }
 0x165   :  { %v2608_v62 = vpop.eup %2607  ;;  %v2288_v1 = vmul.f32 -1.442695, %v780_v35  ;;  %v784_v5 = vadd.f32 %v783_v59, %v3772_v31  ;;  %2627 = vrcp.f32 %v1617_v25  ;;  %v3992_v33 = vpop.f32.mrb[16].mxu1 }
 0x166   :  { %v2610_v6 = vpop.eup %2609  ;;  %2629 = vrcp.f32 %v1567_v51  ;;  %v3994_v53 = vpop.f32.mrb[17].mxu1 }
 0x167   :  { %v2612_v7 = vpop.eup %2611  ;;  %2631 = vpow2.f32 %v2288_v1  ;;  %v2289_v12 = vmul.f32 -1.442695, %v784_v5  ;;  %v1858_v13 = vmul.f32 %v2610_v6, %v2602_v30  ;;  %v782_v6 = vadd.f32 %v781_v40, %v3802_v54 }
 0x168   :  { %v2614_v18 = vpop.eup %2613  ;;  %2633 = vtanh.f32 %v768_v58  ;;  %v3999_v58 = vpop.f32.mrb[18].mxu1  ;;  %v1018_v40 = vadd.f32 %v3935_v3, %v3802_v54 }
 0x169   :  { %v2616_v41 = vpop.eup %2615  ;;  %2635 = vpow2.f32 %v2289_v12  ;;  %v787_v29 = vpop.f32.mrb[48].mxu0  ;;  %v1859_v32 = vmul.f32 %v2614_v18, %v2606_v49  ;;  %v4004_v49 = vld [vmem:[%s4521_s3] sm:$0x3] }
 0x16a   :  { %v2618_v25 = vpop.eup %2617  ;;  %v1568_v27 = vadd.f32 1.0, %v2616_v41  ;;  %2637 = vtanh.f32 %v772_v8  ;;  %v789_v35 = vpop.f32.mrb[49].mxu0  ;;  %2380 = vmatprep.mubr.bf16.mxu1 %v4004_v49 }
 0x16b   :  { %v2620_v51 = vpop.eup %2619  ;;  %v790_v30 = vadd.f32 %v789_v35, %v3772_v31  ;;  %v791_v36 = vpop.f32.mrb[50].mxu0  ;;  %v1949_v59 = vpack.c.bf16 %v1859_v32, %v1858_v13  ;;  %2639 = vpow2.f32 %v2336_v15  ;;  %v2337_v35 = vmul.f32 -1.442695, %v1024_v21 }
 0x16c   :  { %v2622_v1 = vpop.eup %2621  ;;  %2641 = vrcp.f32 %v1568_v27  ;;  %v1569_v5 = vadd.f32 1.0, %v2620_v51  ;;  %v793_v8 = vpop.f32.mrb[51].mxu0 }
 0x16d   :  { %v4007_v12 = vpop.f32.mrb[19].mxu1  ;;  %v2624_v13 = vpop.eup %2623  ;;  %2643 = vtanh.f32 %v778_v20  ;;  %v2290_v19 = vmul.f32 -1.442695, %v790_v30  ;;  %v794_v15 = vadd.f32 %v793_v8, %v3772_v31  ;;  %2364 = vmatprep.subr.bf16.mxu1 %v1949_v59  ;;  %v788_v30 = vadd.f32 %v787_v29, %v3802_v54 }
 0x16e   :  { %v2626_v18 = vpop.eup %2625  ;;  %2645 = vrcp.f32 %v1569_v5  ;;  %2365 = vmatpush3.bf16.xpose.msra.mxu1 %v1941_v61  ;;  %v4017_v8 = vpop.f32.mrb[20].mxu1 }
 0x16f   :  { %v2628_v41 = vpop.eup %2627  ;;  %2647 = vpow2.f32 %v2290_v19  ;;  %v2291_v32 = vmul.f32 -1.442695, %v794_v15  ;;  %v1860_v27 = vmul.f32 %v2626_v18, %v2608_v62  ;;  %v4019_v3 = vpop.f32.mrb[21].mxu1  ;;  %v4021_v19 = vmul.f32 %v2624_v13, %v2618_v25 }
 0x170   :  { %v2630_v51 = vpop.eup %2629  ;;  %2649 = vtanh.f32 %v782_v6  ;;  %v4024_v29 = vpop.f32.mrb[22].mxu1  ;;  %v4026_v18 = vmul.f32 %v2628_v41, %v2622_v1  ;;  %v1022_v1 = vadd.f32 %v3942_v10, %v3802_v54 }
 0x171   :  { %v2632_v20 = vpop.eup %2631  ;;  %2651 = vpow2.f32 %v2291_v32  ;;  %v797_v59 = vpop.f32.mrb[52].mxu0  ;;  %v1861_v5 = vmul.f32 %v2630_v51, %v2612_v7  ;;  %4534 = vst [vmem:[#allocation5_spill] sm:$0xff] %v4021_v19  ;;  %v792_v51 = vadd.f32 %v791_v36, %v3802_v54 }
 0x172   :  { %v2634_v45 = vpop.eup %2633  ;;  %v1570_v52 = vadd.f32 1.0, %v2632_v20  ;;  %v799_v61 = vpop.f32.mrb[53].mxu0  ;;  %2653 = vtanh.f32 %v1018_v40  ;;  %4535 = vst [vmem:[#allocation6_spill] sm:$0xff] %v4026_v18 }
 0x173   :  { %v2636_v62 = vpop.eup %2635  ;;  %v800_v21 = vadd.f32 %v799_v61, %v3772_v31  ;;  %v801_v6 = vpop.f32.mrb[54].mxu0  ;;  %v1950_v15 = vpack.c.bf16 %v1861_v5, %v1860_v27  ;;  %2655 = vpow2.f32 %v2337_v35 }
 0x174   :  { %v2638_v7 = vpop.eup %2637  ;;  %2657 = vrcp.f32 %v1570_v52  ;;  %v1571_v32 = vadd.f32 1.0, %v2636_v62  ;;  %v803_v40 = vpop.f32.mrb[55].mxu0 }
 0x175   :  { %v4029_v20 = vpop.f32.mrb[23].mxu1  ;;  %v2640_v25 = vpop.eup %2639  ;;  %2659 = vtanh.f32 %v788_v30  ;;  %v2292_v13 = vmul.f32 -1.442695, %v800_v21  ;;  %v804_v61 = vadd.f32 %v803_v40, %v3772_v31  ;;  %2366 = vmatprep.subr.bf16.mxu1 %v1950_v15  ;;  %v798_v21 = vadd.f32 %v797_v59, %v3802_v54 }
 0x176   :  { %v2642_v27 = vpop.eup %2641  ;;  %2661 = vrcp.f32 %v1571_v32  ;;  %2367 = vmatpush3.bf16.xpose.msra.mxu1 %v1942_v24  ;;  %v1618_v5 = vadd.f32 1.0, %v2640_v25  ;;  %v4040_v16 = vpop.f32.mrb[24].mxu1  ;;  %v1030_v59 = vadd.f32 %v3957_v48, %v3772_v31 }
 0x177   :  { %v2644_v41 = vpop.eup %2643  ;;  %2663 = vpow2.f32 %v2292_v13  ;;  %v2293_v36 = vmul.f32 -1.442695, %v804_v61  ;;  %v1862_v35 = vmul.f32 %v2642_v27, %v2634_v45  ;;  %v4042_v40 = vpop.f32.mrb[25].mxu1 }
 0x178   :  { %v2646_v52 = vpop.eup %2645  ;;  %2665 = vtanh.f32 %v792_v51  ;;  %v4047_v61 = vpop.f32.mrb[26].mxu1 }
 0x179   :  { %v2648_v62 = vpop.eup %2647  ;;  %2667 = vpow2.f32 %v2293_v36  ;;  %v807_v15 = vpop.f32.mrb[56].mxu0  ;;  %v1863_v9 = vmul.f32 %v2646_v52, %v2638_v7  ;;  %v802_v36 = vadd.f32 %v801_v6, %v3802_v54 }
 0x17a   :  { %v2650_v24 = vpop.eup %2649  ;;  %v1572_v10 = vadd.f32 1.0, %v2648_v62  ;;  %v809_v32 = vpop.f32.mrb[57].mxu0  ;;  %2669 = vtanh.f32 %v1022_v1 }
 0x17b   :  { %v2652_v45 = vpop.eup %2651  ;;  %v810_v51 = vadd.f32 %v809_v32, %v3772_v31  ;;  %v811_v25 = vpop.f32.mrb[58].mxu0  ;;  %v1951_v13 = vpack.c.bf16 %v1863_v9, %v1862_v35  ;;  %2671 = vrcp.f32 %v1618_v5 }
 0x17c   :  { %v2654_v7 = vpop.eup %2653  ;;  %2673 = vrcp.f32 %v1572_v10  ;;  %v1573_v27 = vadd.f32 1.0, %v2652_v45  ;;  %v813_v52 = vpop.f32.mrb[59].mxu0  ;;  %v2338_v10 = vmul.f32 -1.442695, %v1030_v59 }
 0x17d   :  { %v4050_v1 = vpop.f32.mrb[27].mxu1  ;;  %v2656_v62 = vpop.eup %2655  ;;  %2675 = vtanh.f32 %v798_v21  ;;  %v2294_v30 = vmul.f32 -1.442695, %v810_v51  ;;  %v814_v32 = vadd.f32 %v813_v52, %v3772_v31  ;;  %2368 = vmatprep.subr.bf16.mxu1 %v1951_v13  ;;  %v1028_v13 = vadd.f32 %v3955_v44, %v3802_v54 }
 0x17e   :  { %v2658_v35 = vpop.eup %2657  ;;  %2677 = vrcp.f32 %v1573_v27  ;;  %2369 = vmatpush3.bf16.xpose.msra.mxu1 %v1943_v50  ;;  %v1619_v48 = vadd.f32 1.0, %v2656_v62  ;;  %v4058_v27 = vpop.f32.mrb[28].mxu1 }
 0x17f   :  { %v2660_v5 = vpop.eup %2659  ;;  %2679 = vpow2.f32 %v2294_v30  ;;  %v2295_v9 = vmul.f32 -1.442695, %v814_v32  ;;  %v1864_v6 = vmul.f32 %v2658_v35, %v2644_v41  ;;  %v4060_v50 = vpop.f32.mrb[29].mxu1 }
 0x180   :  { %v2662_v45 = vpop.eup %2661  ;;  %2681 = vtanh.f32 %v802_v36  ;;  %v4065_v62 = vpop.f32.mrb[30].mxu1 }
 0x181   :  { %v2664_v46 = vpop.eup %2663  ;;  %2683 = vpow2.f32 %v2295_v9  ;;  %v817_v21 = vpop.f32.mrb[60].mxu0  ;;  %v1865_v51 = vmul.f32 %v2662_v45, %v2650_v24  ;;  %v1034_v24 = vadd.f32 %v3966_v0, %v3772_v31  ;;  %v812_v0 = vadd.f32 %v811_v25, %v3802_v54 }
 0x182   :  { %v2666_v52 = vpop.eup %2665  ;;  %v1574_v37 = vadd.f32 1.0, %v2664_v46  ;;  %v819_v42 = vpop.f32.mrb[61].mxu0  ;;  %2685 = vrcp.f32 %v1619_v48  ;;  %v808_v46 = vadd.f32 %v807_v15, %v3802_v54 }
 0x183   :  { %v2668_v30 = vpop.eup %2667  ;;  %v820_v41 = vadd.f32 %v819_v42, %v3772_v31  ;;  %v821_v59 = vpop.f32.mrb[62].mxu0  ;;  %v1952_v36 = vpack.c.bf16 %v1865_v51, %v1864_v6  ;;  %2687 = vpow2.f32 %v2338_v10 }
 0x184   :  { %v2670_v44 = vpop.eup %2669  ;;  %2689 = vrcp.f32 %v1574_v37  ;;  %v1575_v32 = vadd.f32 1.0, %v2668_v30  ;;  %v823_v35 = vpop.f32.mrb[63].mxu0  ;;  %v2339_v37 = vmul.f32 -1.442695, %v1034_v24 }
 0x185   :  { %v4068_v48 = vpop.f32.mrb[31].mxu1  ;;  %v2672_v9 = vpop.eup %2671  ;;  %v2296_v45 = vmul.f32 -1.442695, %v820_v41  ;;  %v824_v42 = vadd.f32 %v823_v35, %v3772_v31  ;;  %2370 = vmatprep.subr.bf16.mxu1 %v1952_v36  ;;  %2691 = vtanh.f32 %v1028_v13  ;;  %v818_v13 = vadd.f32 %v817_v21, %v3802_v54 }
 0x186   :  { %v2674_v6 = vpop.eup %2673  ;;  %2693 = vrcp.f32 %v1575_v32  ;;  %2371 = vmatpush3.bf16.xpose.msra.mxu1 %v1944_v11  ;;  %v4075_v41 = vmul.f32 %v2672_v9, %v2654_v7  ;;  %v4078_v4 = vpop.f32.mrb[32].mxu1  ;;  %v822_v9 = vadd.f32 %v821_v59, %v3802_v54 }
 0x187   :  { %v2676_v10 = vpop.eup %2675  ;;  %2695 = vpow2.f32 %v2296_v45  ;;  %v2297_v15 = vmul.f32 -1.442695, %v824_v42  ;;  %v1866_v51 = vmul.f32 %v2674_v6, %v2660_v5  ;;  %v4081_v7 = vpop.f32.mrb[33].mxu1 }
 0x188   :  { %v2678_v30 = vpop.eup %2677  ;;  %2697 = vtanh.f32 %v808_v46  ;;  %4536 = vst [vmem:[#allocation7_spill] sm:$0xff] %v4075_v41  ;;  %v4084_v42 = vpop.f32.mrb[34].mxu1 }
 0x189   :  { %v2680_v35 = vpop.eup %2679  ;;  %2699 = vpow2.f32 %v2297_v15  ;;  %v827_v36 = vpop.f32.mrb[64].mxu0  ;;  %v1867_v32 = vmul.f32 %v2678_v30, %v2666_v52 }
 0x18a   :  { %v2682_v25 = vpop.eup %2681  ;;  %v1576_v55 = vadd.f32 1.0, %v2680_v35  ;;  %2701 = vtanh.f32 %v812_v0  ;;  %v829_v63 = vpop.f32.mrb[65].mxu0 }
 0x18b   :  { %v2684_v11 = vpop.eup %2683  ;;  %v830_v5 = vadd.f32 %v829_v63, %v3772_v31  ;;  %v831_v24 = vpop.f32.mrb[66].mxu0  ;;  %v1953_v45 = vpack.c.bf16 %v1867_v32, %v1866_v51  ;;  %2703 = vpow2.f32 %v2339_v37  ;;  %v1032_v32 = vadd.f32 %v3962_v56, %v3802_v54 }
 0x18c   :  { %v2686_v46 = vpop.eup %2685  ;;  %2705 = vrcp.f32 %v1576_v55  ;;  %v1577_v21 = vadd.f32 1.0, %v2684_v11  ;;  %v833_v52 = vpop.f32.mrb[67].mxu0 }
 0x18d   :  { %v2688_v6 = vpop.eup %2687  ;;  %2707 = vtanh.f32 %v818_v13  ;;  %v2298_v0 = vmul.f32 -1.442695, %v830_v5  ;;  %v834_v15 = vadd.f32 %v833_v52, %v3772_v31  ;;  %2372 = vmatprep.subr.bf16.mxu1 %v1953_v45  ;;  %v4087_v30 = vpop.f32.mrb[35].mxu1  ;;  %v4089_v51 = vmul.f32 %v2686_v46, %v2670_v44 }
 0x18e   :  { %v2690_v37 = vpop.eup %2689  ;;  %2709 = vrcp.f32 %v1577_v21  ;;  %2373 = vmatpush3.bf16.xpose.msra.mxu1 %v1945_v38  ;;  %v1620_v55 = vadd.f32 1.0, %v2688_v6  ;;  %v828_v5 = vadd.f32 %v827_v36, %v3802_v54  ;;  %v832_v36 = vadd.f32 %v831_v24, %v3802_v54 }
 0x18f   :  { %4537 = vst [vmem:[#allocation8_spill] sm:$0xff] %v4089_v51  ;;  %v4094_v59 = vpop.eup %2691  ;;  %2711 = vpow2.f32 %v2298_v0  ;;  %v2299_v35 = vmul.f32 -1.442695, %v834_v15  ;;  %v1868_v13 = vmul.f32 %v2690_v37, %v2676_v10 }
 0x190   :  { %v2694_v63 = vpop.eup %2693  ;;  %2713 = vtanh.f32 %v822_v9  ;;  %v1040_v9 = vadd.f32 %v3977_v39, %v3772_v31  ;;  %v4109_v39 = vpop.f32.mrb[36].mxu1 }
 0x191   :  { %v2696_v11 = vpop.eup %2695  ;;  %2715 = vpow2.f32 %v2299_v35  ;;  %v837_v22 = vpop.f32.mrb[68].mxu0  ;;  %v1869_v28 = vmul.f32 %v2694_v63, %v2682_v25 }
 0x192   :  { %v2698_v38 = vpop.eup %2697  ;;  %v1578_v45 = vadd.f32 1.0, %v2696_v11  ;;  %v839_v46 = vpop.f32.mrb[69].mxu0  ;;  %2717 = vrcp.f32 %v1620_v55  ;;  %v2340_v11 = vmul.f32 -1.442695, %v1040_v9  ;;  %v838_v26 = vadd.f32 %v837_v22, %v3802_v54 }
 0x193   :  { %v2700_v21 = vpop.eup %2699  ;;  %v840_v10 = vadd.f32 %v839_v46, %v3772_v31  ;;  %v841_v52 = vpop.f32.mrb[70].mxu0  ;;  %v1954_v56 = vpack.c.bf16 %v1869_v28, %v1868_v13  ;;  %2719 = vtanh.f32 %v1032_v32 }
 0x194   :  { %v2702_v6 = vpop.eup %2701  ;;  %2721 = vrcp.f32 %v1578_v45  ;;  %v1579_v0 = vadd.f32 1.0, %v2700_v21  ;;  %v843_v15 = vpop.f32.mrb[71].mxu0 }
 0x195   :  { %v2704_v25 = vpop.eup %2703  ;;  %2723 = vtanh.f32 %v828_v5  ;;  %v2300_v37 = vmul.f32 -1.442695, %v840_v10  ;;  %v844_v55 = vadd.f32 %v843_v15, %v3772_v31  ;;  %2374 = vmatprep.subr.bf16.mxu1 %v1954_v56  ;;  %v4111_v28 = vpop.f32.mrb[37].mxu1 }
 0x196   :  { %v2706_v35 = vpop.eup %2705  ;;  %2725 = vrcp.f32 %v1579_v0  ;;  %2375 = vmatpush3.bf16.xpose.msra.mxu1 %v1946_v14  ;;  %v1621_v13 = vadd.f32 1.0, %v2704_v25  ;;  %v4113_v45 = vpop.f32.mrb[38].mxu1  ;;  %v1044_v25 = vadd.f32 %v3987_v60, %v3772_v31 }
 0x197   :  { %v2708_v32 = vpop.eup %2707  ;;  %2727 = vpow2.f32 %v2300_v37  ;;  %v2301_v63 = vmul.f32 -1.442695, %v844_v55  ;;  %v1870_v24 = vmul.f32 %v2706_v35, %v2698_v38  ;;  %v4117_v2 = vpop.f32.mrb[39].mxu1 }
 0x198   :  { %v2710_v5 = vpop.eup %2709  ;;  %2729 = vtanh.f32 %v832_v36 }
 0x199   :  { %v2712_v46 = vpop.eup %2711  ;;  %2731 = vpow2.f32 %v2301_v63  ;;  %v847_v21 = vpop.f32.mrb[72].mxu0  ;;  %v1871_v10 = vmul.f32 %v2710_v5, %v2702_v6 }
 0x19a   :  { %v2714_v14 = vpop.eup %2713  ;;  %v1580_v56 = vadd.f32 1.0, %v2712_v46  ;;  %v849_v0 = vpop.f32.mrb[73].mxu0  ;;  %2733 = vrcp.f32 %v1621_v13 }
 0x19b   :  { %v2716_v38 = vpop.eup %2715  ;;  %v850_v9 = vadd.f32 %v849_v0, %v3772_v31  ;;  %v851_v15 = vpop.f32.mrb[74].mxu0  ;;  %v1955_v36 = vpack.c.bf16 %v1871_v10, %v1870_v24  ;;  %2735 = vpow2.f32 %v2340_v11  ;;  %v842_v24 = vadd.f32 %v841_v52, %v3802_v54 }
 0x19c   :  { %v2718_v37 = vpop.eup %2717  ;;  %2737 = vrcp.f32 %v1580_v56  ;;  %v1581_v6 = vadd.f32 1.0, %v2716_v38  ;;  %v853_v55 = vpop.f32.mrb[75].mxu0  ;;  %v4538_v11 = vpack.c.bf16 %v3953_v43, %v3950_v34  ;;  %v2341_v56 = vmul.f32 -1.442695, %v1044_v25 }
 0x19d   :  { %v2720_v35 = vpop.eup %2719  ;;  %v2302_v63 = vmul.f32 -1.442695, %v850_v9  ;;  %v854_v5 = vadd.f32 %v853_v55, %v3772_v31  ;;  %2376 = vmatprep.subr.bf16.mxu1 %v1955_v36  ;;  %2739 = vtanh.f32 %v1038_v57  ;;  %v4129_v60 = vmul.f32 %v2718_v37, %v4094_v59  ;;  %v4132_v43 = vpop.f32.mrb[40].mxu1 }
 0x19e   :  { %v2722_v13 = vpop.eup %2721  ;;  %2741 = vrcp.f32 %v1581_v6  ;;  %2377 = vmatpush3.bf16.xpose.msra.mxu1 %v4538_v11  ;;  %v848_v57 = vadd.f32 %v847_v21, %v3802_v54  ;;  %v4135_v25 = vpop.f32.mrb[41].mxu1 }
 0x19f   :  { %4539 = vst [vmem:[#allocation9_spill] sm:$0xff] %v4129_v60  ;;  %v2724_v46 = vpop.eup %2723  ;;  %2743 = vpow2.f32 %v2302_v63  ;;  %v2303_v22 = vmul.f32 -1.442695, %v854_v5  ;;  %v1872_v10 = vmul.f32 %v2722_v13, %v2708_v32  ;;  %v852_v63 = vadd.f32 %v851_v15, %v3802_v54  ;;  %v4138_v5 = vpop.f32.mrb[42].mxu1 }
 0x1a0   :  { %v2726_v0 = vpop.eup %2725  ;;  %2745 = vtanh.f32 %v838_v26  ;;  %4540 = vst [vmem:[#allocation10_spill] sm:$0xff] %v4138_v5 }
 0x1a1   :  { %v2728_v38 = vpop.eup %2727  ;;  %2747 = vpow2.f32 %v2303_v22  ;;  %v857_v9 = vpop.f32.mrb[76].mxu0  ;;  %v1873_v52 = vmul.f32 %v2726_v0, %v2714_v14  ;;  %v4542_v0 = vpack.c.bf16 %v3973_v23, %v3971_v17 }
 0x1a2   :  { %v2730_v36 = vpop.eup %2729  ;;  %v1582_v6 = vadd.f32 1.0, %v2728_v38  ;;  %2749 = vtanh.f32 %v842_v24  ;;  %v859_v34 = vpop.f32.mrb[77].mxu0 }
 0x1a3   :  { %v2732_v59 = vpop.eup %2731  ;;  %v860_v37 = vadd.f32 %v859_v34, %v3772_v31  ;;  %v861_v55 = vpop.f32.mrb[78].mxu0  ;;  %v1956_v32 = vpack.c.bf16 %v1873_v52, %v1872_v10  ;;  %2751 = vpow2.f32 %v2341_v56 }
 0x1a4   :  { %v2734_v26 = vpop.eup %2733  ;;  %2753 = vrcp.f32 %v1582_v6  ;;  %v1583_v21 = vadd.f32 1.0, %v2732_v59  ;;  %v863_v14 = vpop.f32.mrb[79].mxu0 }
 0x1a5   :  { %v2736_v13 = vpop.eup %2735  ;;  %2755 = vtanh.f32 %v848_v57  ;;  %v2304_v24 = vmul.f32 -1.442695, %v860_v37  ;;  %v864_v11 = vadd.f32 %v863_v14, %v3772_v31  ;;  %2378 = vmatprep.subr.bf16.mxu1 %v1956_v32  ;;  %v4141_v22 = vpop.f32.mrb[43].mxu1  ;;  %v4143_v10 = vmul.f32 %v2734_v26, %v2720_v35 }
 0x1a6   :  { %v2738_v56 = vpop.eup %2737  ;;  %2757 = vrcp.f32 %v1583_v21  ;;  %2379 = vmatpush3.bf16.xpose.msra.mxu1 %v4542_v0  ;;  %v1622_v15 = vadd.f32 1.0, %v2736_v13  ;;  %v1042_v57 = vadd.f32 %v3984_v47, %v3802_v54  ;;  %v858_v37 = vadd.f32 %v857_v9, %v3802_v54  ;;  %v4159_v14 = vpop.f32.mrb[44].mxu1 }
 0x1a7   :  { %4541 = vst [vmem:[#allocation11_spill] sm:$0xff] %v4143_v10  ;;  %v4148_v38 = vpop.eup %2739  ;;  %2759 = vpow2.f32 %v2304_v24  ;;  %v2305_v52 = vmul.f32 -1.442695, %v864_v11  ;;  %v4152_v6 = vmul.f32 %v2738_v56, %v2724_v46  ;;  %4543 = vst [vmem:[#allocation12_spill] sm:$0xff] %v4159_v14  ;;  %v1050_v13 = vadd.f32 %v3994_v53, %v3772_v31  ;;  %v4166_v24 = vpop.f32.mrb[45].mxu1 }
 0x1a8   :  { %v2742_v34 = vpop.eup %2741  ;;  %2761 = vtanh.f32 %v852_v63  ;;  %v862_v56 = vadd.f32 %v861_v55, %v3802_v54 }
 0x1a9   :  { %v2744_v59 = vpop.eup %2743  ;;  %2763 = vpow2.f32 %v2305_v52  ;;  %v867_v17 = vpop.f32.mrb[80].mxu0  ;;  %v4157_v23 = vmul.f32 %v2742_v34, %v2730_v36 }
 0x1aa   :  { %v2746_v32 = vpop.eup %2745  ;;  %v1584_v26 = vadd.f32 1.0, %v2744_v59  ;;  %v869_v21 = vpop.f32.mrb[81].mxu0  ;;  %2765 = vrcp.f32 %v1622_v15 }
 0x1ab   :  { %v2748_v47 = vpop.eup %2747  ;;  %v870_v46 = vadd.f32 %v869_v21, %v3772_v31  ;;  %v871_v63 = vpop.f32.mrb[82].mxu0  ;;  %2767 = vtanh.f32 %v1042_v57 }
 0x1ac   :  { %v2750_v36 = vpop.eup %2749  ;;  %2769 = vrcp.f32 %v1584_v26  ;;  %v1585_v11 = vadd.f32 1.0, %v2748_v47  ;;  %v873_v0 = vpop.f32.mrb[83].mxu0  ;;  %v2342_v47 = vmul.f32 -1.442695, %v1050_v13 }
 0x1ad   :  { %v4169_v15 = vpop.f32.mrb[46].mxu1  ;;  %v2752_v52 = vpop.eup %2751  ;;  %2771 = vtanh.f32 %v858_v37  ;;  %v2306_v34 = vmul.f32 -1.442695, %v870_v46  ;;  %v874_v57 = vadd.f32 %v873_v0, %v3772_v31  ;;  %2381 = vmatmul.mubr.bf16.vlgmr.msra.gmra.mrb[60].mxu1 %v4004_v49  ;;  %v1048_v0 = vadd.f32 %v3992_v33, %v3802_v54 }
 0x1ae   :  { %4544 = vst [vmem:[#allocation13_spill] sm:$0xff] %v4169_v15  ;;  %v4173_v53 = vpop.f32.mrb[47].mxu1  ;;  %v2754_v59 = vpop.eup %2753  ;;  %2773 = vrcp.f32 %v1585_v11  ;;  %v1623_v21 = vadd.f32 1.0, %v2752_v52  ;;  %2398 = vmatprep.mubr.bf16.mxu1 %v4004_v49 }
 0x1af   :  { %v2756_v26 = vpop.eup %2755  ;;  %2775 = vpow2.f32 %v2306_v34  ;;  %v2307_v55 = vmul.f32 -1.442695, %v874_v57  ;;  %v4176_v35 = vmul.f32 %v2754_v59, %v2746_v32  ;;  %v4182_v49 = vpop.f32.mrb[48].mxu1  ;;  %v868_v59 = vadd.f32 %v867_v17, %v3802_v54 }
 0x1b0   :  { %v2758_v44 = vpop.eup %2757  ;;  %2777 = vtanh.f32 %v862_v56  ;;  %4545 = vst [vmem:[#allocation14_spill] sm:$0xff] %v4182_v49  ;;  %v1054_v56 = vadd.f32 %v4007_v12, %v3772_v31  ;;  %v4189_v33 = vpop.f32.mrb[49].mxu1  ;;  %v872_v57 = vadd.f32 %v871_v63, %v3802_v54 }
 0x1b1   :  { %v2760_v37 = vpop.eup %2759  ;;  %2779 = vpow2.f32 %v2307_v55  ;;  %v877_v46 = vpop.f32.mrb[84].mxu0  ;;  %v4180_v9 = vmul.f32 %v2758_v44, %v2750_v36 }
 0x1b2   :  { %v2762_v11 = vpop.eup %2761  ;;  %v1586_v52 = vadd.f32 1.0, %v2760_v37  ;;  %v879_v60 = vpop.f32.mrb[85].mxu0  ;;  %2781 = vrcp.f32 %v1623_v21 }
 0x1b3   :  { %v2764_v34 = vpop.eup %2763  ;;  %v880_v32 = vadd.f32 %v879_v60, %v3772_v31  ;;  %v881_v13 = vpop.f32.mrb[86].mxu0  ;;  %2783 = vpow2.f32 %v2342_v47 }
 0x1b4   :  { %v2766_v44 = vpop.eup %2765  ;;  %2785 = vrcp.f32 %v1586_v52  ;;  %v1587_v36 = vadd.f32 1.0, %v2764_v34  ;;  %v883_v21 = vpop.f32.mrb[87].mxu0  ;;  %v2343_v34 = vmul.f32 -1.442695, %v1054_v56 }
 0x1b5   :  { %v4192_v55 = vpop.f32.mrb[50].mxu1  ;;  %v2768_v37 = vpop.eup %2767  ;;  %v2308_v60 = vmul.f32 -1.442695, %v880_v32  ;;  %v884_v47 = vadd.f32 %v883_v21, %v3772_v31  ;;  %2787 = vtanh.f32 %v1048_v0  ;;  %v4199_v41 = vmul.f32 %v2766_v44, %v4148_v38 }
 0x1b6   :  { %4546 = vst [vmem:[#allocation15_spill] sm:$0xff] %v4192_v55  ;;  %v4195_v10 = vpop.f32.mrb[51].mxu1  ;;  %v2770_v12 = vpop.eup %2769  ;;  %2789 = vrcp.f32 %v1587_v36  ;;  %v878_v0 = vadd.f32 %v877_v46, %v3802_v54 }
 0x1b7   :  { %4547 = vst [vmem:[#allocation16_spill] sm:$0xff] %v4195_v10  ;;  %4548 = vst [vmem:[#allocation17_spill] sm:$0xff] %v4199_v41  ;;  %v2772_v52 = vpop.eup %2771  ;;  %2791 = vpow2.f32 %v2308_v60  ;;  %v2309_v17 = vmul.f32 -1.442695, %v884_v47  ;;  %v4201_v51 = vmul.f32 %v2770_v12, %v2756_v26  ;;  %v4206_v44 = vpop.f32.mrb[52].mxu1 }
 0x1b8   :  { %v2774_v19 = vpop.eup %2773  ;;  %2793 = vtanh.f32 %v868_v59  ;;  %4549 = vst [vmem:[#allocation18_spill] sm:$0xff] %v4206_v44  ;;  %v4211_v47 = vpop.f32.mrb[53].mxu1 }
 0x1b9   :  { %v2776_v32 = vpop.eup %2775  ;;  %2795 = vpow2.f32 %v2309_v17  ;;  %v887_v21 = vpop.f32.mrb[88].mxu0  ;;  %v4204_v18 = vmul.f32 %v2774_v19, %v2762_v11  ;;  %4550 = vst [vmem:[#allocation19_spill] sm:$0xff] %v4211_v47  ;;  %v882_v11 = vadd.f32 %v881_v13, %v3802_v54  ;;  %v1052_v13 = vadd.f32 %v3999_v58, %v3802_v54 }
 0x1ba   :  { %v2778_v36 = vpop.eup %2777  ;;  %v1588_v63 = vadd.f32 1.0, %v2776_v32  ;;  %2797 = vtanh.f32 %v872_v57  ;;  %v889_v38 = vpop.f32.mrb[89].mxu0 }
 0x1bb   :  { %v2780_v60 = vpop.eup %2779  ;;  %v890_v56 = vadd.f32 %v889_v38, %v3772_v31  ;;  %v891_v26 = vpop.f32.mrb[90].mxu0  ;;  %2799 = vpow2.f32 %v2343_v34 }
 0x1bc   :  { %v2782_v46 = vpop.eup %2781  ;;  %2801 = vrcp.f32 %v1588_v63  ;;  %v1589_v19 = vadd.f32 1.0, %v2780_v60  ;;  %v893_v12 = vpop.f32.mrb[91].mxu0 }
 0x1bd   :  { %v4214_v57 = vpop.f32.mrb[54].mxu1  ;;  %v2784_v17 = vpop.eup %2783  ;;  %2803 = vtanh.f32 %v878_v0  ;;  %v2310_v32 = vmul.f32 -1.442695, %v890_v56  ;;  %v894_v38 = vadd.f32 %v893_v12, %v3772_v31  ;;  %v4219_v34 = vmul.f32 %v2782_v46, %v2768_v37 }
 0x1be   :  { %4551 = vst [vmem:[#allocation20_spill] sm:$0xff] %v4214_v57  ;;  %v4217_v44 = vpop.f32.mrb[55].mxu1  ;;  %v2786_v59 = vpop.eup %2785  ;;  %2805 = vrcp.f32 %v1589_v19  ;;  %v1624_v55 = vadd.f32 1.0, %v2784_v17  ;;  %v888_v37 = vadd.f32 %v887_v21, %v3802_v54 }
 0x1bf   :  { %4552 = vst [vmem:[#allocation21_spill] sm:$0xff] %v4217_v44  ;;  %4553 = vst [vmem:[#allocation22_spill] sm:$0xff] %v4219_v34  ;;  %v4221_v49 = vpop.eup %2787  ;;  %2807 = vpow2.f32 %v2310_v32  ;;  %v2311_v63 = vmul.f32 -1.442695, %v894_v38  ;;  %v4225_v60 = vmul.f32 %v2786_v59, %v2772_v52  ;;  %v1060_v59 = vadd.f32 %v4019_v3, %v3772_v31  ;;  %v4237_v21 = vpop.f32.mrb[56].mxu1 }
 0x1c0   :  { %v2790_v0 = vpop.eup %2789  ;;  %2809 = vtanh.f32 %v882_v11  ;;  %4554 = vst [vmem:[#allocation23_spill] sm:$0xff] %v4237_v21 }
 0x1c1   :  { %v2792_v12 = vpop.eup %2791  ;;  %2811 = vpow2.f32 %v2311_v63  ;;  %v897_v46 = vpop.f32.mrb[92].mxu0  ;;  %v4230_v19 = vmul.f32 %v2790_v0, %v2778_v36  ;;  %v892_v0 = vadd.f32 %v891_v26, %v3802_v54 }
 0x1c2   :  { %v2794_v17 = vpop.eup %2793  ;;  %v1590_v32 = vadd.f32 1.0, %v2792_v12  ;;  %v899_v38 = vpop.f32.mrb[93].mxu0  ;;  %2813 = vrcp.f32 %v1624_v55 }
 0x1c3   :  { %v2796_v57 = vpop.eup %2795  ;;  %v900_v58 = vadd.f32 %v899_v38, %v3772_v31  ;;  %v901_v52 = vpop.f32.mrb[94].mxu0  ;;  %2815 = vtanh.f32 %v1052_v13 }
 0x1c4   :  { %v2798_v63 = vpop.eup %2797  ;;  %2817 = vrcp.f32 %v1590_v32  ;;  %v1591_v36 = vadd.f32 1.0, %v2796_v57  ;;  %v903_v12 = vpop.f32.mrb[95].mxu0  ;;  %v2344_v32 = vmul.f32 -1.442695, %v1060_v59 }
 0x1c5   :  { %v4240_v55 = vpop.f32.mrb[57].mxu1  ;;  %v2800_v56 = vpop.eup %2799  ;;  %2819 = vtanh.f32 %v888_v37  ;;  %v2312_v38 = vmul.f32 -1.442695, %v900_v58  ;;  %v904_v13 = vadd.f32 %v903_v12, %v3772_v31  ;;  %v1058_v58 = vadd.f32 %v4017_v8, %v3802_v54 }
 0x1c6   :  { %4555 = vst [vmem:[#allocation24_spill] sm:$0xff] %v4240_v55  ;;  %v4243_v41 = vpop.f32.mrb[58].mxu1  ;;  %v2802_v3 = vpop.eup %2801  ;;  %2821 = vrcp.f32 %v1591_v36  ;;  %v1625_v11 = vadd.f32 1.0, %v2800_v56 }
 0x1c7   :  { %4556 = vst [vmem:[#allocation25_spill] sm:$0xff] %v4243_v41  ;;  %v4245_v34 = vpop.f32.mrb[59].mxu1  ;;  %v2804_v21 = vpop.eup %2803  ;;  %2823 = vpow2.f32 %v2312_v38  ;;  %v2313_v57 = vmul.f32 -1.442695, %v904_v13  ;;  %v4247_v26 = vmul.f32 %v2802_v3, %v2794_v17  ;;  %v1064_v17 = vadd.f32 %v4029_v20, %v3772_v31 }
 0x1c8   :  { %4557 = vst [vmem:[#allocation26_spill] sm:$0xff] %v4245_v34  ;;  %v2806_v15 = vpop.eup %2805  ;;  %2825 = vtanh.f32 %v892_v0  ;;  %v902_v20 = vadd.f32 %v901_v52, %v3802_v54 }
 0x1c9   :  { %v2808_v55 = vpop.eup %2807  ;;  %2827 = vpow2.f32 %v2313_v57  ;;  %v907_v37 = vpop.f32.mrb[96].mxu0  ;;  %v4251_v12 = vmul.f32 %v2806_v15, %v2798_v63  ;;  %v898_v15 = vadd.f32 %v897_v46, %v3802_v54  ;;  %v2345_v0 = vmul.f32 -1.442695, %v1064_v17 }
 0x1ca   :  { %v2810_v36 = vpop.eup %2809  ;;  %v1592_v56 = vadd.f32 1.0, %v2808_v55  ;;  %v909_v41 = vpop.f32.mrb[97].mxu0  ;;  %2829 = vrcp.f32 %v1625_v11  ;;  %v1990_v11 = vld [vmem:[%s4522_s4] sm:$0x7] }
 0x1cb   :  { %v2812_v34 = vpop.eup %2811  ;;  %v910_v38 = vadd.f32 %v909_v41, %v3772_v31  ;;  %v911_v59 = vpop.f32.mrb[98].mxu0  ;;  %2831 = vpow2.f32 %v2344_v32  ;;  %v3108_v32 = vmov 0  }
 0x1cc   :  { %v2814_v13 = vpop.eup %2813  ;;  %2833 = vrcp.f32 %v1592_v56  ;;  %v1593_v8 = vadd.f32 1.0, %v2812_v34  ;;  %v913_v63 = vpop.f32.mrb[99].mxu0  ;;  %2456 = vset.pattern.permute.xlu0 %v3108_v32 }
 0x1cd   :  { %v2816_v55 = vpop.eup %2815  ;;  %v2314_v41 = vmul.f32 -1.442695, %v910_v38  ;;  %v914_v3 = vadd.f32 %v913_v63, %v3772_v31  ;;  %2835 = vtanh.f32 %v1058_v58  ;;  %v4265_v34 = vmul.f32 %v2814_v13, %v4221_v49  ;;  %1993 = vperm.xlu0 %2456, %v1990_v11  }
 0x1ce   :  { %v2818_v57 = vpop.eup %2817  ;;  %2837 = vrcp.f32 %v1593_v8  ;;  %v908_v58 = vadd.f32 %v907_v37, %v3802_v54  ;;  %v912_v37 = vadd.f32 %v911_v59, %v3802_v54 }
 0x1cf   :  { %4558 = vst [vmem:[#allocation27_spill] sm:$0xff] %v4265_v34  ;;  %v2820_v46 = vpop.eup %2819  ;;  %2839 = vpow2.f32 %v2314_v41  ;;  %v2315_v56 = vmul.f32 -1.442695, %v914_v3  ;;  %v4267_v44 = vmul.f32 %v2818_v57, %v2804_v21 }
 0x1d0   :  { %v2822_v38 = vpop.eup %2821  ;;  %2841 = vtanh.f32 %v898_v15 }
 0x1d1   :  { %v2824_v63 = vpop.eup %2823  ;;  %2843 = vpow2.f32 %v2315_v56  ;;  %v917_v8 = vpop.f32.mrb[100].mxu0  ;;  %v4270_v52 = vmul.f32 %v2822_v38, %v2810_v36 }
 0x1d2   :  { %v2826_v32 = vpop.eup %2825  ;;  %v1594_v14 = vadd.f32 1.0, %v2824_v63  ;;  %2845 = vtanh.f32 %v902_v20  ;;  %v919_v49 = vpop.f32.mrb[101].mxu0 }
 0x1d3   :  { %v2828_v13 = vpop.eup %2827  ;;  %v920_v41 = vadd.f32 %v919_v49, %v3772_v31  ;;  %v921_v17 = vpop.f32.mrb[102].mxu0  ;;  %2847 = vpow2.f32 %v2345_v0  ;;  %v1062_v0 = vadd.f32 %v4024_v29, %v3802_v54 }
 0x1d4   :  { %v2830_v15 = vpop.eup %2829  ;;  %2849 = vrcp.f32 %v1594_v14  ;;  %v1595_v11 = vadd.f32 1.0, %v2828_v13  ;;  %v923_v3 = vpop.f32.mrb[103].mxu0 }
 0x1d5   :  { %v2832_v36 = vpop.eup %2831  ;;  %2851 = vtanh.f32 %v908_v58  ;;  %v2316_v57 = vmul.f32 -1.442695, %v920_v41  ;;  %v924_v20 = vadd.f32 %v923_v3, %v3772_v31  ;;  %v4277_v56 = vmul.f32 %v2830_v15, %v2816_v55 }
 0x1d6   :  { %v2834_v38 = vpop.eup %2833  ;;  %2853 = vrcp.f32 %v1595_v11  ;;  %v1626_v63 = vadd.f32 1.0, %v2832_v36  ;;  %v918_v55 = vadd.f32 %v917_v8, %v3802_v54 }
 0x1d7   :  { %4559 = vst [vmem:[#allocation28_spill] sm:$0xff] %v4277_v56  ;;  %v4281_v49 = vpop.eup %2835  ;;  %2855 = vpow2.f32 %v2316_v57  ;;  %v2317_v14 = vmul.f32 -1.442695, %v924_v20  ;;  %v4283_v13 = vmul.f32 %v2834_v38, %v2820_v46  ;;  %v1070_v38 = vadd.f32 %v4042_v40, %v3772_v31 }
 0x1d8   :  { %v2838_v58 = vpop.eup %2837  ;;  %2857 = vtanh.f32 %v912_v37 }
 0x1d9   :  { %v2840_v41 = vpop.eup %2839  ;;  %2859 = vpow2.f32 %v2317_v14  ;;  %v927_v15 = vpop.f32.mrb[104].mxu0  ;;  %v4288_v11 = vmul.f32 %v2838_v58, %v2826_v32  ;;  %v922_v32 = vadd.f32 %v921_v17, %v3802_v54  ;;  %v2346_v34 = vmul.f32 -1.442695, %v1070_v38 }
 0x1da   :  { %v2842_v3 = vpop.eup %2841  ;;  %v1596_v29 = vadd.f32 1.0, %v2840_v41  ;;  %v929_v36 = vpop.f32.mrb[105].mxu0  ;;  %2861 = vrcp.f32 %v1626_v63 }
 0x1db   :  { %v2844_v57 = vpop.eup %2843  ;;  %v930_v46 = vadd.f32 %v929_v36, %v3772_v31  ;;  %v931_v20 = vpop.f32.mrb[106].mxu0  ;;  %2863 = vtanh.f32 %v1062_v0 }
 0x1dc   :  { %v2846_v8 = vpop.eup %2845  ;;  %2865 = vrcp.f32 %v1596_v29  ;;  %v1597_v14 = vadd.f32 1.0, %v2844_v57  ;;  %v933_v58 = vpop.f32.mrb[107].mxu0 }
 0x1dd   :  { %v2848_v41 = vpop.eup %2847  ;;  %2867 = vtanh.f32 %v918_v55  ;;  %v2318_v63 = vmul.f32 -1.442695, %v930_v46  ;;  %v934_v59 = vadd.f32 %v933_v58, %v3772_v31  ;;  %v1068_v55 = vadd.f32 %v4040_v16, %v3802_v54 }
 0x1de   :  { %v2850_v36 = vpop.eup %2849  ;;  %2869 = vrcp.f32 %v1597_v14  ;;  %v1627_v0 = vadd.f32 1.0, %v2848_v41 }
 0x1df   :  { %v2852_v21 = vpop.eup %2851  ;;  %2871 = vpow2.f32 %v2318_v63  ;;  %v2319_v40 = vmul.f32 -1.442695, %v934_v59  ;;  %v4297_v56 = vmul.f32 %v2850_v36, %v2842_v3  ;;  %v1074_v3 = vadd.f32 %v4050_v1, %v3772_v31 }
 0x1e0   :  { %v2854_v37 = vpop.eup %2853  ;;  %2873 = vtanh.f32 %v922_v32  ;;  %v932_v1 = vadd.f32 %v931_v20, %v3802_v54 }
 0x1e1   :  { %v2856_v29 = vpop.eup %2855  ;;  %2875 = vpow2.f32 %v2319_v40  ;;  %v937_v17 = vpop.f32.mrb[108].mxu0  ;;  %v4301_v57 = vmul.f32 %v2854_v37, %v2846_v8  ;;  %v928_v37 = vadd.f32 %v927_v15, %v3802_v54 }
 0x1e2   :  { %v2858_v46 = vpop.eup %2857  ;;  %v1598_v58 = vadd.f32 1.0, %v2856_v29  ;;  %v939_v14 = vpop.f32.mrb[109].mxu0  ;;  %2877 = vrcp.f32 %v1627_v0 }
 0x1e3   :  { %v2860_v41 = vpop.eup %2859  ;;  %v940_v59 = vadd.f32 %v939_v14, %v3772_v31  ;;  %v941_v38 = vpop.f32.mrb[110].mxu0  ;;  %2879 = vpow2.f32 %v2346_v34 }
 0x1e4   :  { %v2862_v63 = vpop.eup %2861  ;;  %2881 = vrcp.f32 %v1598_v58  ;;  %v1599_v16 = vadd.f32 1.0, %v2860_v41  ;;  %v943_v8 = vpop.f32.mrb[111].mxu0  ;;  %v2347_v41 = vmul.f32 -1.442695, %v1074_v3 }
 0x1e5   :  { %v2864_v36 = vpop.eup %2863  ;;  %v2320_v40 = vmul.f32 -1.442695, %v940_v59  ;;  %v944_v0 = vadd.f32 %v943_v8, %v3772_v31  ;;  %2883 = vtanh.f32 %v1068_v55  ;;  %v4311_v29 = vmul.f32 %v2862_v63, %v4281_v49 }
 0x1e6   :  { %v2866_v34 = vpop.eup %2865  ;;  %2885 = vrcp.f32 %v1599_v16  ;;  %v938_v59 = vadd.f32 %v937_v17, %v3802_v54 }
 0x1e7   :  { %v2868_v14 = vpop.eup %2867  ;;  %2887 = vpow2.f32 %v2320_v40  ;;  %v2321_v32 = vmul.f32 -1.442695, %v944_v0  ;;  %v1890_v58 = vmul.f32 %v2866_v34, %v2852_v21 }
 0x1e8   :  { %v2870_v47 = vpop.eup %2869  ;;  %2889 = vtanh.f32 %v928_v37  ;;  %v942_v37 = vadd.f32 %v941_v38, %v3802_v54 }
 0x1e9   :  { %v2872_v15 = vpop.eup %2871  ;;  %2891 = vpow2.f32 %v2321_v32  ;;  %v947_v8 = vpop.f32.mrb[112].mxu0  ;;  %v1891_v55 = vmul.f32 %v2870_v47, %v2858_v46 }
 0x1ea   :  { %v2874_v5 = vpop.eup %2873  ;;  %v1600_v49 = vadd.f32 1.0, %v2872_v15  ;;  %2893 = vtanh.f32 %v932_v1  ;;  %v949_v63 = vpop.f32.mrb[113].mxu0  ;;  %v4560_v1 = vpack.c.bf16 %v4157_v23, %v4152_v6 }
 0x1eb   :  { %v2876_v16 = vpop.eup %2875  ;;  %v950_v20 = vadd.f32 %v949_v63, %v3772_v31  ;;  %v951_v10 = vpop.f32.mrb[114].mxu0  ;;  %v1965_v40 = vpack.c.bf16 %v1891_v55, %v1890_v58  ;;  %2895 = vpow2.f32 %v2347_v41  ;;  %v1072_v41 = vadd.f32 %v4047_v61, %v3802_v54 }
 0x1ec   :  { %v2878_v21 = vpop.eup %2877  ;;  %2897 = vrcp.f32 %v1600_v49  ;;  %v1601_v3 = vadd.f32 1.0, %v2876_v16  ;;  %v953_v0 = vpop.f32.mrb[115].mxu0  ;;  %v948_v63 = vadd.f32 %v947_v8, %v3802_v54  ;;  %v952_v8 = vadd.f32 %v951_v10, %v3802_v54 }
 0x1ed   :  { %v2880_v17 = vpop.eup %2879  ;;  %2899 = vtanh.f32 %v938_v59  ;;  %v2322_v32 = vmul.f32 -1.442695, %v950_v20  ;;  %v954_v47 = vadd.f32 %v953_v0, %v3772_v31  ;;  %2382 = vmatprep.subr.bf16.mxu1 %v1965_v40  ;;  %v4318_v46 = vmul.f32 %v2878_v21, %v2864_v36 }
 0x1ee   :  { %v2882_v34 = vpop.eup %2881  ;;  %2901 = vrcp.f32 %v1601_v3  ;;  %2383 = vmatpush3.bf16.xpose.msra.mxu1 %v4560_v1  ;;  %v1628_v58 = vadd.f32 1.0, %v2880_v17  ;;  %v1080_v0 = vadd.f32 %v4060_v50, %v3772_v31 }
 0x1ef   :  { %v4325_v38 = vpop.eup %2883  ;;  %2903 = vpow2.f32 %v2322_v32  ;;  %v2323_v15 = vmul.f32 -1.442695, %v954_v47  ;;  %v1892_v59 = vmul.f32 %v2882_v34, %v2868_v14  ;;  %v1980_v55 = vpack.c.bf16 %v4318_v46, %v4311_v29 }
 0x1f0   :  { %v2886_v36 = vpop.eup %2885  ;;  %2905 = vtanh.f32 %v942_v37 }
 0x1f1   :  { %v2888_v49 = vpop.eup %2887  ;;  %2907 = vpow2.f32 %v2323_v15  ;;  %v957_v6 = vpop.f32.mrb[116].mxu0  ;;  %v1893_v23 = vmul.f32 %v2886_v36, %v2874_v5  ;;  %v2348_v36 = vmul.f32 -1.442695, %v1080_v0 }
 0x1f2   :  { %v2890_v16 = vpop.eup %2889  ;;  %v1602_v20 = vadd.f32 1.0, %v2888_v49  ;;  %v959_v40 = vpop.f32.mrb[117].mxu0  ;;  %2909 = vrcp.f32 %v1628_v58  ;;  %v4561_v58 = vpack.c.bf16 %v4180_v9, %v4176_v35 }
 0x1f3   :  { %v2892_v61 = vpop.eup %2891  ;;  %v960_v21 = vadd.f32 %v959_v40, %v3772_v31  ;;  %v961_v3 = vpop.f32.mrb[118].mxu0  ;;  %v1966_v14 = vpack.c.bf16 %v1893_v23, %v1892_v59  ;;  %2911 = vtanh.f32 %v1072_v41 }
 0x1f4   :  { %v2894_v37 = vpop.eup %2893  ;;  %2913 = vrcp.f32 %v1602_v20  ;;  %v1603_v17 = vadd.f32 1.0, %v2892_v61  ;;  %v963_v32 = vpop.f32.mrb[119].mxu0  ;;  %v1078_v20 = vadd.f32 %v4058_v27, %v3802_v54 }
 0x1f5   :  { %v2896_v5 = vpop.eup %2895  ;;  %2915 = vtanh.f32 %v948_v63  ;;  %v2324_v47 = vmul.f32 -1.442695, %v960_v21  ;;  %v964_v34 = vadd.f32 %v963_v32, %v3772_v31  ;;  %2384 = vmatprep.subr.bf16.mxu1 %v1966_v14 }
 0x1f6   :  { %v2898_v1 = vpop.eup %2897  ;;  %2917 = vrcp.f32 %v1603_v17  ;;  %2385 = vmatpush3.bf16.xpose.msra.mxu1 %v4561_v58  ;;  %v1629_v41 = vadd.f32 1.0, %v2896_v5  ;;  %v962_v58 = vadd.f32 %v961_v3, %v3802_v54 }
 0x1f7   :  { %v2900_v50 = vpop.eup %2899  ;;  %2919 = vpow2.f32 %v2324_v47  ;;  %v2325_v15 = vmul.f32 -1.442695, %v964_v34  ;;  %v1894_v59 = vmul.f32 %v2898_v1, %v2890_v16  ;;  %v1084_v16 = vadd.f32 %v4068_v48, %v3772_v31 }
 0x1f8   :  { %v2902_v10 = vpop.eup %2901  ;;  %2921 = vtanh.f32 %v952_v8  ;;  %v4562_v48 = vpack.c.bf16 %v4204_v18, %v4201_v51 }
 0x1f9   :  { %v2904_v49 = vpop.eup %2903  ;;  %2923 = vpow2.f32 %v2325_v15  ;;  %v967_v63 = vpop.f32.mrb[120].mxu0  ;;  %v1895_v23 = vmul.f32 %v2902_v10, %v2894_v37  ;;  %v958_v37 = vadd.f32 %v957_v6, %v3802_v54  ;;  %v2349_v15 = vmul.f32 -1.442695, %v1084_v16 }
 0x1fa   :  { %v2906_v40 = vpop.eup %2905  ;;  %v1604_v61 = vadd.f32 1.0, %v2904_v49  ;;  %v969_v21 = vpop.f32.mrb[121].mxu0  ;;  %2925 = vrcp.f32 %v1629_v41  ;;  %v968_v49 = vadd.f32 %v967_v63, %v3802_v54  ;;  %v1090_v63 = vadd.f32 %v4081_v7, %v3772_v31 }
 0x1fb   :  { %v2908_v35 = vpop.eup %2907  ;;  %v970_v9 = vadd.f32 %v969_v21, %v3772_v31  ;;  %v971_v14 = vpop.f32.mrb[122].mxu0  ;;  %v1967_v17 = vpack.c.bf16 %v1895_v23, %v1894_v59  ;;  %2927 = vpow2.f32 %v2348_v36 }
 0x1fc   :  { %v2910_v0 = vpop.eup %2909  ;;  %2929 = vrcp.f32 %v1604_v61  ;;  %v1605_v8 = vadd.f32 1.0, %v2908_v35  ;;  %v973_v32 = vpop.f32.mrb[123].mxu0 }
 0x1fd   :  { %v2912_v27 = vpop.eup %2911  ;;  %v2326_v5 = vmul.f32 -1.442695, %v970_v9  ;;  %v974_v47 = vadd.f32 %v973_v32, %v3772_v31  ;;  %2386 = vmatprep.subr.bf16.mxu1 %v1967_v17  ;;  %2931 = vtanh.f32 %v1078_v20  ;;  %v4346_v34 = vmul.f32 %v2910_v0, %v4325_v38 }
 0x1fe   :  { %v2914_v1 = vpop.eup %2913  ;;  %2933 = vrcp.f32 %v1605_v8  ;;  %2387 = vmatpush3.bf16.xpose.msra.mxu1 %v4562_v48  ;;  %v972_v17 = vadd.f32 %v971_v14, %v3802_v54  ;;  %v4563_v14 = vpack.c.bf16 %v4230_v19, %v4225_v60 }
 0x1ff   :  { %v2916_v41 = vpop.eup %2915  ;;  %2935 = vpow2.f32 %v2326_v5  ;;  %v2327_v6 = vmul.f32 -1.442695, %v974_v47  ;;  %v1896_v59 = vmul.f32 %v2914_v1, %v2900_v50  ;;  %v1082_v47 = vadd.f32 %v4065_v62, %v3802_v54 }
 0x200   :  { %v2918_v36 = vpop.eup %2917  ;;  %2937 = vtanh.f32 %v958_v37 }
 0x201   :  { %v2920_v10 = vpop.eup %2919  ;;  %2939 = vpow2.f32 %v2327_v6  ;;  %v977_v38 = vpop.f32.mrb[124].mxu0  ;;  %v1897_v23 = vmul.f32 %v2918_v36, %v2906_v40 }
 0x202   :  { %v2922_v20 = vpop.eup %2921  ;;  %v1606_v61 = vadd.f32 1.0, %v2920_v10  ;;  %2941 = vtanh.f32 %v962_v58  ;;  %v979_v3 = vpop.f32.mrb[125].mxu0 }
 0x203   :  { %v2924_v21 = vpop.eup %2923  ;;  %v980_v18 = vadd.f32 %v979_v3, %v3772_v31  ;;  %2943 = vpow2.f32 %v2349_v15  ;;  %v981_v51 = vpop.f32.mrb[126].mxu0  ;;  %v1968_v35 = vpack.c.bf16 %v1897_v23, %v1896_v59  ;;  %v2350_v15 = vmul.f32 -1.442695, %v1090_v63 }
 0x204   :  { %v2926_v9 = vpop.eup %2925  ;;  %2945 = vrcp.f32 %v1606_v61  ;;  %v1607_v50 = vadd.f32 1.0, %v2924_v21  ;;  %v983_v16 = vpop.f32.mrb[127].mxu0 }
 0x205   :  { %v2928_v40 = vpop.eup %2927  ;;  %2947 = vtanh.f32 %v968_v49  ;;  %v2328_v0 = vmul.f32 -1.442695, %v980_v18  ;;  %v984_v8 = vadd.f32 %v983_v16, %v3772_v31  ;;  %2388 = vmatprep.subr.bf16.mxu1 %v1968_v35  ;;  %v4358_v37 = vmul.f32 %v2926_v9, %v2912_v27 }
 0x206   :  { %v2930_v32 = vpop.eup %2929  ;;  %2949 = vrcp.f32 %v1607_v50  ;;  %v1630_v5 = vadd.f32 1.0, %v2928_v40  ;;  %2389 = vmatpush3.bf16.xpose.msra.mxu1 %v4563_v14 }
 0x207   :  { %v2932_v1 = vpop.eup %2931  ;;  %2951 = vpow2.f32 %v2328_v0  ;;  %v2329_v7 = vmul.f32 -1.442695, %v984_v8  ;;  %v1898_v58 = vmul.f32 %v2930_v32, %v2916_v41  ;;  %v1981_v48 = vpack.c.bf16 %v4358_v37, %v4346_v34  ;;  %v4568_v37 = vld [vmem:[#allocation16_spill] sm:$0xff] }
 0x208   :  { %v2934_v6 = vpop.eup %2933  ;;  %2953 = vrcp.f32 %v1630_v5  ;;  %v1094_v41 = vadd.f32 %v4087_v30, %v3772_v31  ;;  %v4564_v30 = vpack.c.bf16 %v4251_v12, %v4247_v26  ;;  %v1100_v5 = vadd.f32 %v4111_v28, %v3772_v31 }
 0x209   :  { %v2936_v27 = vpop.eup %2935  ;;  %2955 = vtanh.f32 %v972_v17  ;;  %v4367_v59 = vpop.f32.mrb[128].mxu0  ;;  %v1899_v36 = vmul.f32 %v2934_v6, %v2922_v20  ;;  %v978_v20 = vadd.f32 %v977_v38, %v3802_v54  ;;  %v982_v38 = vadd.f32 %v981_v51, %v3802_v54 }
 0x20a   :  { %v2938_v62 = vpop.eup %2937  ;;  %v1608_v10 = vadd.f32 1.0, %v2936_v27  ;;  %2957 = vpow2.f32 %v2329_v7  ;;  %v989_v60 = vpop.f32.mrb[129].mxu0  ;;  %v2351_v40 = vmul.f32 -1.442695, %v1094_v41  ;;  %v1088_v28 = vadd.f32 %v4078_v4, %v3802_v54 }
 0x20b   :  { %v2940_v19 = vpop.eup %2939  ;;  %2959 = vtanh.f32 %v1082_v47  ;;  %v990_v49 = vadd.f32 %v989_v60, %v3772_v31  ;;  %v4372_v23 = vpop.f32.mrb[130].mxu0  ;;  %v1969_v61 = vpack.c.bf16 %v1899_v36, %v1898_v58  ;;  %v988_v4 = vadd.f32 %v4367_v59, %v3802_v54 }
 0x20c   :  { %v2942_v3 = vpop.eup %2941  ;;  %2961 = vrcp.f32 %v1608_v10  ;;  %v1609_v21 = vadd.f32 1.0, %v2940_v19  ;;  %v993_v18 = vpop.f32.mrb[131].mxu0  ;;  %v2352_v19 = vmul.f32 -1.442695, %v1100_v5  ;;  %v1108_v34 = vadd.f32 %v4132_v43, %v3802_v54 }
 0x20d   :  { %v2944_v35 = vpop.eup %2943  ;;  %2963 = vpow2.f32 %v2350_v15  ;;  %2390 = vmatprep.subr.bf16.mxu1 %v1969_v61  ;;  %v2330_v17 = vmul.f32 -1.442695, %v990_v49  ;;  %v994_v16 = vadd.f32 %v993_v18, %v3772_v31  ;;  %v1104_v61 = vadd.f32 %v4117_v2, %v3772_v31 }
 0x20e   :  { %v2946_v9 = vpop.eup %2945  ;;  %2965 = vrcp.f32 %v1609_v21  ;;  %v1631_v50 = vadd.f32 1.0, %v2944_v35  ;;  %2391 = vmatpush3.bf16.xpose.msra.mxu1 %v4564_v30 }
 0x20f   :  { %v2948_v63 = vpop.eup %2947  ;;  %v1900_v0 = vmul.f32 %v2946_v9, %v2938_v62  ;;  %v2331_v26 = vmul.f32 -1.442695, %v994_v16 }
 0x210   :  { %v2950_v8 = vpop.eup %2949  ;;  %2967 = vrcp.f32 %v1631_v50 }
 0x211   :  { %v2952_v32 = vpop.eup %2951  ;;  %2969 = vtanh.f32 %v978_v20  ;;  %v4382_v47 = vpop.f32.mrb[132].mxu0  ;;  %v1901_v14 = vmul.f32 %v2950_v8, %v2942_v3  ;;  %v1092_v20 = vadd.f32 %v4084_v42, %v3802_v54 }
 0x212   :  { %v2954_v7 = vpop.eup %2953  ;;  %v1610_v58 = vadd.f32 1.0, %v2952_v32  ;;  %2971 = vpow2.f32 %v2330_v17  ;;  %v999_v12 = vpop.f32.mrb[133].mxu0  ;;  %v2353_v17 = vmul.f32 -1.442695, %v1104_v61 }
 0x213   :  { %v2956_v6 = vpop.eup %2955  ;;  %2973 = vpow2.f32 %v2351_v40  ;;  %v4384_v27 = vpop.f32.mrb[134].mxu0  ;;  %v1970_v15 = vpack.c.bf16 %v1901_v14, %v1900_v0  ;;  %v4386_v36 = vmul.f32 %v2954_v7, %v2932_v1  ;;  %v1000_v49 = vadd.f32 %v999_v12, %v3772_v31 }
 0x214   :  { %v2958_v62 = vpop.eup %2957  ;;  %2975 = vrcp.f32 %v1610_v58  ;;  %v1003_v51 = vpop.f32.mrb[135].mxu0  ;;  %v4565_v1 = vpack.c.bf16 %v4270_v52, %v4267_v44  ;;  %v992_v0 = vadd.f32 %v4372_v23, %v3802_v54  ;;  %v4566_v14 = vpack.c.bf16 %v4288_v11, %v4283_v13 }
 0x215   :  { %v2960_v10 = vpop.eup %2959  ;;  %2977 = vtanh.f32 %v982_v38  ;;  %v1611_v60 = vadd.f32 1.0, %v2958_v62  ;;  %2392 = vmatprep.subr.bf16.mxu1 %v1970_v15  ;;  %v2332_v9 = vmul.f32 -1.442695, %v1000_v49  ;;  %v1004_v44 = vadd.f32 %v1003_v51, %v3772_v31 }
 0x216   :  { %v2962_v41 = vpop.eup %2961  ;;  %2979 = vpow2.f32 %v2331_v26  ;;  %2393 = vmatpush3.bf16.xpose.msra.mxu1 %v4565_v1  ;;  %v1098_v26 = vadd.f32 %v4109_v39, %v3802_v54  ;;  %v998_v11 = vadd.f32 %v4382_v47, %v3802_v54  ;;  %v1102_v49 = vadd.f32 %v4113_v45, %v3802_v54 }
 0x217   :  { %v2964_v3 = vpop.eup %2963  ;;  %2981 = vrcp.f32 %v1611_v60  ;;  %v1902_v21 = vmul.f32 %v2962_v41, %v2948_v63  ;;  %v1110_v63 = vadd.f32 %v4135_v25, %v3772_v31  ;;  %v2333_v5 = vmul.f32 -1.442695, %v1004_v44 }
 0x218   :  { %v2966_v18 = vpop.eup %2965  ;;  %2983 = vtanh.f32 %v1088_v28  ;;  %v1632_v35 = vadd.f32 1.0, %v2964_v3  ;;  %v1114_v25 = vadd.f32 %v4141_v22, %v3772_v31  ;;  %v1120_v60 = vadd.f32 %v4166_v24, %v3772_v31 }
 0x219   :  { %2985 = vpow2.f32 %v2352_v19  ;;  %v1903_v50 = vmul.f32 %v2966_v18, %v2956_v6  ;;  %v2354_v15 = vmul.f32 -1.442695, %v1110_v63  ;;  %v1124_v47 = vadd.f32 %v4173_v53, %v3772_v31  ;;  %v4569_v63 = vld [vmem:[#allocation10_spill] sm:$0xff] }
 0x21a   :  { %v2968_v2 = vpop.eup %2967  ;;  %2987 = vrcp.f32 %v1632_v35  ;;  %v2355_v51 = vmul.f32 -1.442695, %v1114_v25  ;;  %v4567_v3 = vpack.c.bf16 %v4301_v57, %v4297_v56  ;;  %v1002_v53 = vadd.f32 %v4384_v27, %v3802_v54 }
 0x21b   :  { %v2970_v52 = vpop.eup %2969  ;;  %2989 = vtanh.f32 %v988_v4  ;;  %v1971_v16 = vpack.c.bf16 %v1903_v50, %v1902_v21  ;;  %v4401_v30 = vmul.f32 %v2968_v2, %v2960_v10  ;;  %v2356_v21 = vmul.f32 -1.442695, %v1120_v60  ;;  %v4574_v60 = vld [vmem:[#allocation24_spill] sm:$0xff] }
 0x21c   :  { %v2972_v59 = vpop.eup %2971  ;;  %2991 = vtanh.f32 %v1092_v20  ;;  %v1130_v35 = vadd.f32 %v4189_v33, %v3772_v31  ;;  %v2357_v56 = vmul.f32 -1.442695, %v1124_v47 }
 0x21d   :  { %v2974_v40 = vpop.eup %2973  ;;  %v1612_v42 = vadd.f32 1.0, %v2972_v59  ;;  %2993 = vpow2.f32 %v2332_v9  ;;  %2394 = vmatprep.subr.bf16.mxu1 %v1971_v16  ;;  %v1982_v8 = vpack.c.bf16 %v4401_v30, %v4386_v36  ;;  %v4447_v16 = vld [vmem:[%s4521_s3] sm:$0x3]  ;;  %v4575_v30 = vld [vmem:[#allocation14_spill] sm:$0xff]  ;;  %s3111_s3 = smov [#allocation2]  }
 0x21e   :  { %v2976_v32 = vpop.eup %2975  ;;  %v1633_v38 = vadd.f32 1.0, %v2974_v40  ;;  %2995 = vpow2.f32 %v2353_v17  ;;  %2395 = vmatpush3.bf16.xpose.msra.mxu1 %v4566_v14  ;;  %v2358_v33 = vmul.f32 -1.442695, %v1130_v35  ;;  %v1112_v40 = vadd.f32 %v4569_v63, %v3802_v54  ;;  %s2182_s24 = sshll.u32 %s3111_s3, 4  ;;  %s2183_s24 = int_to_ptr.vmem [resolvable:$true] %s2182_s24 }
 0x21f   :  { %v2978_v7 = vpop.eup %2977  ;;  %2997 = vrcp.f32 %v1612_v42  ;;  %v1904_v58 = vmul.f32 %v2976_v32, %v2970_v52  ;;  %v4570_v42 = vld [vmem:[#allocation19_spill] sm:$0xff]  ;;  %s3084_s25 = scalar_lea.vmem %s2183_s24, 448  ;;  %p3089_p1 = scmp.lt.s32.totalorder %s2183_s24, %s2183_s24 }
 0x220   :  { %v2980_v23 = vpop.eup %2979  ;;  %2999 = vrcp.f32 %v1633_v38  ;;  %p3085_p0 = scmp.ne.s32.totalorder %s2183_s24, %s3084_s25  ;;  %p3090_p2 = scmp.lt.s32.totalorder %s3084_s25, %s3084_s25 }
 0x221   :  { %v2982_v12 = vpop.eup %2981  ;;  %3001 = vtanh.f32 %v992_v0  ;;  %v1613_v6 = vadd.f32 1.0, %v2980_v23  ;;  %v1140_v0 = vadd.f32 %v4570_v42, %v3772_v31  ;;  %v4571_v23 = vld [vmem:[#allocation12_spill] sm:$0xff] }
 0x222   :  { %v2984_v62 = vpop.eup %2983  ;;  %3003 = vpow2.f32 %v2333_v5  ;;  %v1905_v28 = vmul.f32 %v2982_v12, %v2978_v7  ;;  %v4572_v12 = vld [vmem:[#allocation21_spill] sm:$0xff]  ;;  %v4579_v42 = vld [vmem:[#allocation20_spill] sm:$0xff]  ;;  %p3091_p3 = por %p3090_p2, %p3089_p1 }
 0x223   :  { %v2986_v13 = vpop.eup %2985  ;;  %3005 = vrcp.f32 %v1613_v6  ;;  %v1144_v6 = vadd.f32 %v4572_v12, %v3772_v31  ;;  %v4582_v12 = vld [vmem:[#allocation5_spill] sm:$0xff] }
 0x224   :  { %v2988_v22 = vpop.eup %2987  ;;  %3007 = vtanh.f32 %v1098_v26  ;;  %v1634_v10 = vadd.f32 1.0, %v2986_v13  ;;  %v1972_v39 = vpack.c.bf16 %v1905_v28, %v1904_v58  ;;  %v1118_v26 = vadd.f32 %v4571_v23, %v3802_v54  ;;  %p3092_p4 = pnand %p3091_p3, %p3085_p0 }
 0x225   :  { %v2990_v19 = vpop.eup %2989  ;;  %3009 = vpow2.f32 %v2354_v15  ;;  %v4422_v41 = vmul.f32 %v2988_v22, %v2984_v62  ;;  %v2360_v28 = vmul.f32 -1.442695, %v1140_v0  ;;  %v1142_v0 = vadd.f32 %v4579_v42, %v3802_v54 }
 0x226   :  { %v2992_v61 = vpop.eup %2991  ;;  %3011 = vrcp.f32 %v1634_v10  ;;  %2396 = vmatprep.subr.bf16.mxu1 %v1972_v39  ;;  %v1150_v39 = vadd.f32 %v4574_v60, %v3772_v31 }
 0x227   :  { %v2994_v1 = vpop.eup %2993  ;;  %3013 = vtanh.f32 %v998_v11  ;;  %2397 = vmatpush3.bf16.xpose.msra.mxu1 %v4567_v3  ;;  %v4573_v11 = vld [vmem:[#allocation13_spill] sm:$0xff]  ;;  %v4576_v3 = vld [vmem:[#allocation26_spill] sm:$0xff] }
 0x228   :  { %v2996_v24 = vpop.eup %2995  ;;  %v1614_v4 = vadd.f32 1.0, %v2994_v1  ;;  %3015 = vpow2.f32 %v2355_v51  ;;  %2400 = vmatprep.subr.bf16.mxu1 %v1981_v48  ;;  %v1134_v48 = vadd.f32 %v4568_v37, %v3772_v31  ;;  %v1122_v51 = vadd.f32 %v4573_v11, %v3802_v54 }
 0x229   :  { %v2998_v45 = vpop.eup %2997  ;;  %3017 = vtanh.f32 %v1102_v49  ;;  %v1635_v18 = vadd.f32 1.0, %v2996_v24  ;;  %v2361_v49 = vmul.f32 -1.442695, %v1144_v6  ;;  %v1154_v24 = vadd.f32 %v4576_v3, %v3772_v31 }
 0x22a   :  { %v3000_v20 = vpop.eup %2999  ;;  %3019 = vrcp.f32 %v1614_v4  ;;  %v1906_v57 = vmul.f32 %v2998_v45, %v2990_v19  ;;  %v2359_v5 = vmul.f32 -1.442695, %v1134_v48 }
 0x22b   :  { %v3002_v9 = vpop.eup %3001  ;;  %3021 = vrcp.f32 %v1635_v18  ;;  %v4436_v50 = vmul.f32 %v3000_v20, %v2992_v61  ;;  %v2362_v18 = vmul.f32 -1.442695, %v1150_v39  ;;  %v2363_v37 = vmul.f32 -1.442695, %v1154_v24 }
 0x22c   :  { %v3004_v2 = vpop.eup %3003  ;;  %3023 = vpow2.f32 %v2356_v21 }
 0x22d   :  { %v3006_v27 = vpop.eup %3005  ;;  %3025 = vtanh.f32 %v1002_v53  ;;  %v1615_v17 = vadd.f32 1.0, %v3004_v2  ;;  %v1983_v44 = vpack.c.bf16 %v4436_v50, %v4422_v41 }
 0x22e   :  { %v3008_v52 = vpop.eup %3007  ;;  %3027 = vpow2.f32 %v2357_v56  ;;  %2399 = vmatmul.mubr.bf16.vlgmr.msra.gmra.mrb[64].mxu1 %v4447_v16  ;;  %v1907_v43 = vmul.f32 %v3006_v27, %v3002_v9  ;;  %v4577_v56 = vld [vmem:[#allocation15_spill] sm:$0xff] }
 0x22f   :  { %v3010_v59 = vpop.eup %3009  ;;  %3029 = vrcp.f32 %v1615_v17  ;;  %2416 = vmatprep.mubr.bf16.mxu1 %v4447_v16  ;;  %v4578_v17 = vld [vmem:[#allocation18_spill] sm:$0xff] }
 0x230   :  { %v3012_v32 = vpop.eup %3011  ;;  %3031 = vtanh.f32 %v1108_v34  ;;  %v1636_v38 = vadd.f32 1.0, %v3010_v59  ;;  %v1973_v14 = vpack.c.bf16 %v1907_v43, %v1906_v57  ;;  %v1132_v57 = vadd.f32 %v4577_v56, %v3802_v54  ;;  %v4588_v56 = vld [vmem:[#allocation11_spill] sm:$0xff] }
 0x231   :  { %v3014_v7 = vpop.eup %3013  ;;  %3033 = vpow2.f32 %v2358_v33  ;;  %v4455_v25 = vmul.f32 %v3012_v32, %v3008_v52  ;;  %v1138_v33 = vadd.f32 %v4578_v17, %v3802_v54  ;;  %v4594_v17 = vld [vmem:[#allocation28_spill] sm:$0xff] }
 0x232   :  { %v3016_v58 = vpop.eup %3015  ;;  %3035 = vrcp.f32 %v1636_v38  ;;  %2401 = vmatpush3.bf16.xpose.msra.mxu1 %v1973_v14 }
 0x233   :  { %v3018_v15 = vpop.eup %3017  ;;  %3037 = vtanh.f32 %v1112_v40  ;;  %v1637_v62 = vadd.f32 1.0, %v3016_v58  ;;  %2402 = vmatprep.subr.bf16.mxu1 %v1982_v8  ;;  %v1128_v8 = vadd.f32 %v4575_v30, %v3802_v54  ;;  %v4586_v30 = vld [vmem:[#allocation7_spill] sm:$0xff] }
 0x234   :  { %v3020_v13 = vpop.eup %3019  ;;  %3039 = vpow2.f32 %v2359_v5 }
 0x235   :  { %v3022_v22 = vpop.eup %3021  ;;  %3041 = vrcp.f32 %v1637_v62  ;;  %v1908_v10 = vmul.f32 %v3020_v13, %v3014_v7 }
 0x236   :  { %v3024_v19 = vpop.eup %3023  ;;  %3043 = vtanh.f32 %v1118_v26  ;;  %v1929_v61 = vmul.f32 %v3022_v22, %v3018_v15  ;;  %v4581_v26 = vld [vmem:[#allocation6_spill] sm:$0xff] }
 0x237   :  { %v3026_v47 = vpop.eup %3025  ;;  %v1638_v1 = vadd.f32 1.0, %v3024_v19  ;;  %3045 = vpow2.f32 %v2360_v28  ;;  %v4583_v6 = vpack.c.bf16 %v4581_v26, %v4582_v12  ;;  %v4584_v28 = vld [vmem:[#allocation25_spill] sm:$0xff] }
 0x238   :  { %v3028_v36 = vpop.eup %3027  ;;  %3047 = vtanh.f32 %v1122_v51  ;;  %v1984_v4 = vpack.c.bf16 %v1929_v61, %v4455_v25  ;;  %v4580_v25 = vld [vmem:[#allocation23_spill] sm:$0xff]  ;;  %v1152_v13 = vadd.f32 %v4584_v28, %v3802_v54 }
 0x239   :  { %v3030_v21 = vpop.eup %3029  ;;  %3049 = vrcp.f32 %v1638_v1  ;;  %v1639_v45 = vadd.f32 1.0, %v3028_v36  ;;  %v1148_v58 = vadd.f32 %v4580_v25, %v3802_v54  ;;  %v4585_v36 = vld [vmem:[#allocation8_spill] sm:$0xff] }
 0x23a   :  { %v3032_v53 = vpop.eup %3031  ;;  %3051 = vpow2.f32 %v2361_v49  ;;  %v1909_v35 = vmul.f32 %v3030_v21, %v3026_v47 }
 0x23b   :  { %v3034_v20 = vpop.eup %3033  ;;  %3053 = vrcp.f32 %v1639_v45 }
 0x23c   :  { %v3036_v9 = vpop.eup %3035  ;;  %3055 = vtanh.f32 %v1128_v8  ;;  %v1640_v2 = vadd.f32 1.0, %v3034_v20  ;;  %v1974_v34 = vpack.c.bf16 %v1909_v35, %v1908_v10  ;;  %v4587_v8 = vpack.c.bf16 %v4585_v36, %v4586_v30 }
 0x23d   :  { %v3038_v31 = vpop.eup %3037  ;;  %3057 = vpow2.f32 %v2362_v18  ;;  %v1930_v48 = vmul.f32 %v3036_v9, %v3032_v53 }
 0x23e   :  { %v3040_v27 = vpop.eup %3039  ;;  %3059 = vrcp.f32 %v1640_v2  ;;  %2403 = vmatpush3.bf16.xpose.msra.mxu1 %v1974_v34 }
 0x23f   :  { %v3042_v52 = vpop.eup %3041  ;;  %3061 = vtanh.f32 %v1132_v57  ;;  %v1641_v43 = vadd.f32 1.0, %v3040_v27  ;;  %2404 = vmatprep.subr.bf16.mxu1 %v1983_v44  ;;  %v4589_v57 = vld [vmem:[#allocation9_spill] sm:$0xff] }
 0x240   :  { %v3044_v59 = vpop.eup %3043  ;;  %3063 = vpow2.f32 %v2363_v37  ;;  %v1931_v63 = vmul.f32 %v3042_v52, %v3038_v31  ;;  %v4590_v9 = vpack.c.bf16 %v4588_v56, %v4589_v57  ;;  %v4591_v31 = vld [vmem:[#allocation22_spill] sm:$0xff] }
 0x241   :  { %v3046_v40 = vpop.eup %3045  ;;  %3065 = vrcp.f32 %v1641_v43  ;;  %v3109_v43 = vmov 0.0  }
 0x242   :  { %v3048_v32 = vpop.eup %3047  ;;  %3067 = vtanh.f32 %v1138_v33  ;;  %v1642_v38 = vadd.f32 1.0, %v3046_v40  ;;  %v1985_v5 = vpack.c.bf16 %v1931_v63, %v1930_v48  ;;  %v4592_v48 = vld [vmem:[#allocation17_spill] sm:$0xff]  ;;  %v4595_v33 = vld [vmem:[#allocation27_spill] sm:$0xff] }
 0x243   :  { %v3050_v14 = vpop.eup %3049  ;;  %v4593_v27 = vpack.c.bf16 %v4591_v31, %v4592_v48  ;;  %v4596_v52 = vpack.c.bf16 %v4594_v17, %v4595_v33 }
 0x244   :  { %v3052_v7 = vpop.eup %3051  ;;  %3069 = vrcp.f32 %v1642_v38  ;;  %v1932_v41 = vmul.f32 %v3050_v14, %v3044_v59 }
 0x245   :  { %v3054_v50 = vpop.eup %3053  ;;  %3071 = vtanh.f32 %v1142_v0  ;;  %v1643_v44 = vadd.f32 1.0, %v3052_v7 }
 0x246   :  { %v3056_v23 = vpop.eup %3055  ;;  %2405 = vmatpush3.bf16.xpose.msra.mxu1 %v4583_v6  ;;  %v1933_v15 = vmul.f32 %v3054_v50, %v3048_v32 }
 0x247   :  { %v3058_v62 = vpop.eup %3057  ;;  %3073 = vrcp.f32 %v1643_v44  ;;  %2406 = vmatprep.subr.bf16.mxu1 %v1984_v4 }
 0x248   :  { %v3060_v11 = vpop.eup %3059  ;;  %3075 = vtanh.f32 %v1148_v58  ;;  %v1644_v51 = vadd.f32 1.0, %v3058_v62  ;;  %v1986_v22 = vpack.c.bf16 %v1933_v15, %v1932_v41 }
 0x249   :  { %v3062_v10 = vpop.eup %3061  ;;  %v1934_v60 = vmul.f32 %v3060_v11, %v3056_v23 }
 0x24a   :  { %v3064_v39 = vpop.eup %3063  ;;  %3077 = vrcp.f32 %v1644_v51 }
 0x24b   :  { %v3066_v19 = vpop.eup %3065  ;;  %3079 = vtanh.f32 %v1152_v13  ;;  %v1645_v49 = vadd.f32 1.0, %v3064_v39 }
 0x24c   :  { %v3068_v61 = vpop.eup %3067  ;;  %v1935_v47 = vmul.f32 %v3066_v19, %v3062_v10  ;;  %v1994_v59 = vpop.permute.xlu0 %1993 }
 0x24d   :  { %3081 = vrcp.f32 %v1645_v49 }
 0x24e   :  { %v3070_v1 = vpop.eup %3069  ;;  %2407 = vmatpush3.bf16.xpose.msra.mxu1 %v4587_v8  ;;  %v1987_v54 = vpack.c.bf16 %v1935_v47, %v1934_v60 }
 0x24f   :  { %v3072_v3 = vpop.eup %3071  ;;  %2408 = vmatprep.subr.bf16.mxu1 %v1985_v5  ;;  %v1936_v24 = vmul.f32 %v3070_v1, %v3068_v61 }
 0x251   :  { %v3074_v4 = vpop.eup %3073 }
 0x252   :  { %v3076_v21 = vpop.eup %3075  ;;  %v1937_v45 = vmul.f32 %v3074_v4, %v3072_v3 }
 0x254   :  { %v3078_v18 = vpop.eup %3077  ;;  %v1988_v53 = vpack.c.bf16 %v1937_v45, %v1936_v24 }
 0x255   :  { %v3080_v35 = vpop.eup %3079  ;;  %v1938_v20 = vmul.f32 %v3078_v18, %v3076_v21 }
 0x256   :  { %2409 = vmatpush3.bf16.xpose.msra.mxu1 %v4590_v9 }
 0x257   :  { %v3082_v2 = vpop.eup %3081  ;;  %2410 = vmatprep.subr.bf16.mxu1 %v1986_v22 }
 0x258   :  { %v1939_v34 = vmul.f32 %v3082_v2, %v3080_v35 }
 0x25a   :  { %v1989_v37 = vpack.c.bf16 %v1939_v34, %v1938_v20 }
 0x25e   :  { %2411 = vmatpush3.bf16.xpose.msra.mxu1 %v4593_v27 }
 0x25f   :  { %2412 = vmatprep.subr.bf16.mxu1 %v1987_v54 }
 0x266   :  { %2413 = vmatpush3.bf16.xpose.msra.mxu1 %v4596_v52 }
 0x267   :  { %2414 = vmatprep.subr.bf16.mxu1 %v1988_v53 }
 0x26e   :  { %2415 = vmatpush3.bf16.xpose.msra.mxu1 %v1980_v55 }
 0x26f   :  { %2420 = vmatprep.subr.bf16.mxu1 %v3109_v43 }
 0x275   :  { %2417 = vmatmul.mubr.bf16.vlgmr.msra.gmra.mrb[68].mxu1 %v4447_v16 }
 0x276   :  { %2421 = vmatpush3.bf16.xpose.msra.mxu1 %v1989_v37  ;;  %2422 = vmatprep.mubr.msk.bf16.mxu1 %vm3110_vm2, %v3109_v43 }
 0x27d   :  { %2423 = vmatmul.mubr.bf16.vlgmr.msra.gmra.mrb[72].mxu1 %v4447_v16 }
 0x280   :  { %v2030_v63 = vpop.f32.mrb[60].mxu1 }
 0x281   :  { %v2032_v40 = vpop.f32.mrb[61].mxu1  ;;  %v2031_v42 = vadd.f32 %v2030_v63, %v1994_v59 }
 0x282   :  { %v2034_v0 = vpop.f32.mrb[62].mxu1  ;;  %v2033_v32 = vadd.f32 %v2032_v40, %v1994_v59 }
 0x283   :  { %v2035_v38 = vpop.f32.mrb[63].mxu1 }
 0x284   :  { %v2165_v5 = vcombine.low %v2031_v42, %v2033_v32 }
 0x286   :  { %2171 = vst [vmem:[#allocation2] sm:$0x77] %v2165_v5 }
 0x301   :  { %v2071_v29 = vpop.f32.mrb[64].mxu1 }
 0x302   :  { %v2072_v46 = vadd.f32 %v2071_v29, %v1994_v59  ;;  %v2073_v55 = vpop.f32.mrb[65].mxu1 }
 0x303   :  { %v2074_v14 = vadd.f32 %v2073_v55, %v1994_v59  ;;  %v2075_v7 = vpop.f32.mrb[66].mxu1 }
 0x304   :  { %v2076_v25 = vpop.f32.mrb[67].mxu1 }
 0x305   :  { %v2166_v58 = vcombine.low %v2072_v46, %v2074_v14 }
 0x307   :  { %2172 = vst [vmem:[#allocation2 + $0x8] sm:$0x77] %v2166_v58 }
 0x348   :  { %v2112_v41 = vpop.f32.mrb[68].mxu1 }
 0x349   :  { %v2113_v50 = vadd.f32 %v2112_v41, %v1994_v59  ;;  %v2114_v16 = vpop.f32.mrb[69].mxu1 }
 0x34a   :  { %v2115_v44 = vadd.f32 %v2114_v16, %v1994_v59  ;;  %v2116_v23 = vpop.f32.mrb[70].mxu1 }
 0x34b   :  { %v2117_v26 = vpop.f32.mrb[71].mxu1 }
 0x34c   :  { %v2167_v12 = vcombine.low %v2113_v50, %v2115_v44 }
 0x34e   :  { %2173 = vst [vmem:[#allocation2 + $0x10] sm:$0x77] %v2167_v12 }
 0x350   :  { %v2153_v6 = vpop.f32.mrb[72].mxu1 }
 0x351   :  { %v2154_v15 = vadd.f32 %v2153_v6, %v1994_v59  ;;  %v2424_v62 = vpop.f32.mrb[73].mxu1 }
 0x352   :  { %v2156_v28 = vpop.f32.mrb[74].mxu1 }
 0x353   :  { %2175 = vst.msk [vmem:[#allocation2 + $0x18] sm:$0x7] %vm2174_vm3, %v2154_v15  ;;  %v2425_v13 = vpop.f32.mrb[75].mxu1 }
 0x354   :  { %3095 = shalt.err (!%p3092_p4)
}
 0x355   :  { %s3096_s1 = scalar_lea.hbm %s4523_s5, 448 }
 0x356   :  { %p3097_p5 = scmp.ne.s32.totalorder %s4523_s5, %s3096_s1  ;;  %p3100_p6 = scmp.lt.u32.totalorder %s3096_s1, %s4523_s5 }
 0x358   :  { %p3102_p7 = pnand %p3100_p6, %p3097_p5 }
 0x35a   :  { %3105 = shalt.err (!%p3102_p7)
}
 0x35b   :  { %2185 = dma.vmem_to_hbm [thread:$0]  %s2183_s24, 448, %s4523_s5, [#allocation3]  }
 0x35c   :  { %3106 = dma.done.wait [#allocation3], 448  }
 0x35d   :  { %3107 = vsyncadd [#allocation3], 4294966848 }
 0x35e   :  { %2189 = vsyncpa [#allocation3], 1 }

</bundles_post_ra>
